<compile_context>
chip_gen: v5e
topology: v5e:2x2
jax: 0.10.0
libtpu: 0.0.40
codegen_flags: <defaults>
</compile_context>

<pallas_src>
import jax
import jax.numpy as jnp
from jax import lax
from jax.experimental import pallas as pl
from jax.experimental.pallas import tpu as pltpu

EPS = 1e-5
HI = lax.Precision.HIGHEST   # full-f32 matmuls everywhere (kernel and reference)


def _dss_kernel(x_ref,
                g0_ref, be0_ref,
                w1_ref, b1_ref, g1_ref, be1_ref,
                w2_ref, b2_ref,
                wg1_ref, bg1_ref, wg2_ref, bg2_ref,
                wa_ref, ba_ref, wb_ref, bb_ref,
                g2_ref, be2_ref,
                x_out_ref, gf_out_ref):
    B, C_in, N = x_ref.shape
    inv_m = 1.0 / (B * N)

    def _sum_bn(t):
        # (B, C, N) -> (1, C, 1): lane reduce then tiny major-axis reduce.
        return jnp.sum(jnp.sum(t, axis=2, keepdims=True), axis=0, keepdims=True)

    def batchnorm(v, g_ref, be_ref):
        # v: (B, C, N) f32; gamma/beta refs: (C, 1) f32.
        # One-pass biased batch statistics over the B*N samples per channel.
        s = _sum_bn(v)                                        # (1, C, 1)
        ss = _sum_bn(v * v)                                   # (1, C, 1)
        mean = s * inv_m
        var = ss * inv_m - mean * mean
        scale = g_ref[...][None] * lax.rsqrt(var + EPS)       # (1, C, 1)
        shift = be_ref[...][None] - mean * scale
        return v * scale + shift

    def conv1x1(v, w_ref, b_ref):
        # v: (B, Ci, N) f32; w: (B, Co, Ci) f32 (pre-broadcast); b: (Co, 1) f32.
        out = jnp.einsum("boi,bin->bon", w_ref[...], v,
                         precision=HI,
                         preferred_element_type=jnp.float32)  # (B, Co, N) f32
        return out + b_ref[...][None]

    x = x_ref[...]                                            # (B, C_in, N) f32

    # --- self.x_bn (BatchNorm1d(in_C), train mode) + ReLU --------------------
    x = jnp.maximum(batchnorm(x, g0_ref, be0_ref), 0.0)

    # --- self.mlp: Conv1x1 -> BN -> ReLU -> Conv1x1 ---------------------------
    h = conv1x1(x, w1_ref, b1_ref)                            # (B, hid, N)
    h = jnp.maximum(batchnorm(h, g1_ref, be1_ref), 0.0)
    y = conv1x1(h, w2_ref, b2_ref)                            # (B, C_out, N)

    # --- aggr: max over the set (points) axis ---------------------------------
    gf = jnp.max(y, axis=2)                                   # (B, C_out)
    y = y - gf[:, :, None]                                    # x - global_feat[..., None]

    # --- self.global_feat_mlp: Linear -> ReLU -> Linear -----------------------
    g = jnp.dot(gf, wg1_ref[...], precision=HI,
                preferred_element_type=jnp.float32) + bg1_ref[...]
    g = jnp.maximum(g, 0.0)
    gf_out = jnp.dot(g, wg2_ref[...], precision=HI,
                     preferred_element_type=jnp.float32) + bg2_ref[...]   # (B, C_out)

    # --- self.cat_proj: Conv1x1(x) + Linear(gf)[..., None] -> BN --------------
    xa = conv1x1(y, wa_ref, ba_ref)                           # (B, C_out, N)
    xb = jnp.dot(gf_out, wb_ref[...], precision=HI,
                 preferred_element_type=jnp.float32) + bb_ref[...]        # (B, C_out)
    z = batchnorm(xa + xb[:, :, None], g2_ref, be2_ref)       # (B, C_out, N)

    x_out_ref[...] = z
    gf_out_ref[...] = gf_out


@jax.jit
def dss_layer_forward(x_ncl, params):
    """x_ncl: (B, C_in, N) PyTorch layout. Returns (x: (B, C_out, N), gf: (B, C_out))."""
    B, C_in, N = x_ncl.shape
    C_out = params["w2"].shape[1]

    col = lambda v: v.reshape(-1, 1)                          # (1, C) -> (C, 1)
    # Conv weights: (Ci, Co) -> (B, Co, Ci), pre-broadcast so the kernel's
    # batched einsum needs no in-kernel broadcast/transpose. Tiny arrays.
    def conv_w(w):
        wt = jnp.transpose(w)                                 # (Co, Ci)
        return jnp.broadcast_to(wt, (B,) + wt.shape)          # (B, Co, Ci)

    args = (
        x_ncl,
        col(params["g0"]), col(params["be0"]),
        conv_w(params["w1"]), col(params["b1"]),
        col(params["g1"]), col(params["be1"]),
        conv_w(params["w2"]), col(params["b2"]),
        params["wg1"], params["bg1"],
        params["wg2"], params["bg2"],
        conv_w(params["wa"]), col(params["ba"]),
        params["wb"], params["bb"],
        col(params["g2"]), col(params["be2"]),
    )
    vmem = pl.BlockSpec(memory_space=pltpu.MemorySpace.VMEM)
    x_out, gf_out = pl.pallas_call(
        _dss_kernel,
        out_shape=(
            jax.ShapeDtypeStruct((B, C_out, N), jnp.float32),
            jax.ShapeDtypeStruct((B, C_out), jnp.float32),
        ),
        in_specs=[vmem] * len(args),
        out_specs=(vmem, vmem),
        compiler_params=pltpu.CompilerParams(vmem_limit_bytes=32 * 1024 * 1024),
    )(*args)
    return x_out, gf_out                                       # already (B, C_out, N)


def _reference(x_ncl, p):
    """Pure-JAX f32 reference with the module's math, for a correctness check."""
    mm = lambda a, b: jnp.dot(a, b, precision=HI)              # full-f32 matmul

    def bn(v, g, b):                                           # v: (M, C)
        m = jnp.mean(v, axis=0, keepdims=True)
        s = jnp.mean((v - m) ** 2, axis=0, keepdims=True)
        return (v - m) * lax.rsqrt(s + EPS) * g + b

    B, C_in, N = x_ncl.shape
    x = jnp.transpose(x_ncl, (0, 2, 1)).reshape(B * N, C_in)
    x = jnp.maximum(bn(x, p["g0"], p["be0"]), 0.0)
    h = jnp.maximum(bn(mm(x, p["w1"]) + p["b1"], p["g1"], p["be1"]), 0.0)
    y = (mm(h, p["w2"]) + p["b2"]).reshape(B, N, -1)
    gf = jnp.max(y, axis=1)
    y = y - gf[:, None, :]
    gf_out = mm(jnp.maximum(mm(gf, p["wg1"]) + p["bg1"], 0.0), p["wg2"]) + p["bg2"]
    C_out = y.shape[-1]
    xa = mm(y.reshape(B * N, C_out), p["wa"]) + p["ba"]
    xb = mm(gf_out, p["wb"]) + p["bb"]
    z = (xa.reshape(B, N, C_out) + xb[:, None, :]).reshape(B * N, C_out)
    z = bn(z, p["g2"], p["be2"]).reshape(B, N, C_out)
    return jnp.transpose(z, (0, 2, 1)), gf_out


def make_params(key, in_c, out_c):
    assert in_c == out_c, "DSSLayer's global_feat_mlp requires in_C == out_C"
    hid = out_c // 2
    ks = jax.random.split(key, 16)
    n = lambda k, shp, s=0.1: s * jax.random.normal(k, shp, jnp.float32)
    return {
        # x_bn
        "g0": 1.0 + n(ks[0], (1, in_c)), "be0": n(ks[1], (1, in_c)),
        # mlp: conv1 weight stored transposed (in, out); conv BN; conv2
        "w1": n(ks[2], (in_c, hid)), "b1": n(ks[3], (1, hid)),
        "g1": 1.0 + n(ks[4], (1, hid)), "be1": n(ks[5], (1, hid)),
        "w2": n(ks[6], (hid, out_c)), "b2": n(ks[7], (1, out_c)),
        # global_feat_mlp
        "wg1": n(ks[8], (in_c, out_c)), "bg1": n(ks[9], (1, out_c)),
        "wg2": n(ks[10], (out_c, out_c)), "bg2": n(ks[11], (1, out_c)),
        # cat_proj
        "wa": n(ks[12], (out_c, out_c)), "ba": n(ks[13], (1, out_c)),
        "wb": n(ks[14], (out_c, out_c)), "bb": n(ks[15], (1, out_c)),
        "g2": jnp.ones((1, out_c), jnp.float32),
        "be2": jnp.zeros((1, out_c), jnp.float32),
    }


if __name__ == "__main__":
    B, C, N = 2, 32, 128          # in_C == out_C == 32, points N == 128 (lane-dense)
    key = jax.random.PRNGKey(0)
    kx, kp = jax.random.split(key)
    x = jax.random.normal(kx, (B, C, N), jnp.float32)   # PyTorch (B, C, N) layout
    params = make_params(kp, C, C)

    x_out, gf_out = dss_layer_forward(x, params)
    jax.block_until_ready((x_out, gf_out))

    x_ref, gf_ref = _reference(x, params)
    assert x_out.shape == (B, C, N) and gf_out.shape == (B, C)
    assert jnp.allclose(x_out, x_ref, rtol=2e-2, atol=2e-2)
    assert jnp.allclose(gf_out, gf_ref, rtol=2e-2, atol=2e-2)

    print("KERNEL_OK")
</pallas_src>

<mosaic_0001>
module attributes {stable_mosaic.version = 11 : i64} {
  func.func @_dss_kernel(%arg0: memref<2x32x128xf32, #tpu.memory_space<vmem>>, %arg1: memref<32x1xf32, #tpu.memory_space<vmem>>, %arg2: memref<32x1xf32, #tpu.memory_space<vmem>>, %arg3: memref<2x16x32xf32, #tpu.memory_space<vmem>>, %arg4: memref<16x1xf32, #tpu.memory_space<vmem>>, %arg5: memref<16x1xf32, #tpu.memory_space<vmem>>, %arg6: memref<16x1xf32, #tpu.memory_space<vmem>>, %arg7: memref<2x32x16xf32, #tpu.memory_space<vmem>>, %arg8: memref<32x1xf32, #tpu.memory_space<vmem>>, %arg9: memref<32x32xf32, #tpu.memory_space<vmem>>, %arg10: memref<1x32xf32, #tpu.memory_space<vmem>>, %arg11: memref<32x32xf32, #tpu.memory_space<vmem>>, %arg12: memref<1x32xf32, #tpu.memory_space<vmem>>, %arg13: memref<2x32x32xf32, #tpu.memory_space<vmem>>, %arg14: memref<32x1xf32, #tpu.memory_space<vmem>>, %arg15: memref<32x32xf32, #tpu.memory_space<vmem>>, %arg16: memref<1x32xf32, #tpu.memory_space<vmem>>, %arg17: memref<32x1xf32, #tpu.memory_space<vmem>>, %arg18: memref<32x1xf32, #tpu.memory_space<vmem>>, %arg19: memref<2x32x128xf32, #tpu.memory_space<vmem>>, %arg20: memref<2x32xf32, #tpu.memory_space<vmem>>) attributes {dimension_semantics = [], scalar_prefetch = 0 : i64, scratch_operands = 0 : i64, tpu.core_type = #tpu.core_type<tc>} {
    %c0 = arith.constant 0 : index
    %c0_0 = arith.constant 0 : index
    %c0_1 = arith.constant 0 : index
    %0 = vector.load %arg0[%c0, %c0_0, %c0_1] : memref<2x32x128xf32, #tpu.memory_space<vmem>>, vector<2x32x128xf32>
    %cst = arith.constant dense<0.000000e+00> : vector<2x32xf32>
    %1 = vector.multi_reduction <add>, %0, %cst [2] : vector<2x32x128xf32> to vector<2x32xf32>
    %2 = vector.shape_cast %1 : vector<2x32xf32> to vector<2x32x1xf32>
    %cst_2 = arith.constant dense<0.000000e+00> : vector<32x1xf32>
    %3 = vector.multi_reduction <add>, %2, %cst_2 [0] : vector<2x32x1xf32> to vector<32x1xf32>
    %4 = vector.shape_cast %3 : vector<32x1xf32> to vector<1x32x1xf32>
    %5 = arith.mulf %0, %0 : vector<2x32x128xf32>
    %cst_3 = arith.constant dense<0.000000e+00> : vector<2x32xf32>
    %6 = vector.multi_reduction <add>, %5, %cst_3 [2] : vector<2x32x128xf32> to vector<2x32xf32>
    %7 = vector.shape_cast %6 : vector<2x32xf32> to vector<2x32x1xf32>
    %cst_4 = arith.constant dense<0.000000e+00> : vector<32x1xf32>
    %8 = vector.multi_reduction <add>, %7, %cst_4 [0] : vector<2x32x1xf32> to vector<32x1xf32>
    %9 = vector.shape_cast %8 : vector<32x1xf32> to vector<1x32x1xf32>
    %cst_5 = arith.constant 3.906250e-03 : f32
    %10 = vector.broadcast %cst_5 : f32 to vector<1x32x1xf32>
    %11 = arith.mulf %4, %10 : vector<1x32x1xf32>
    %cst_6 = arith.constant 3.906250e-03 : f32
    %12 = vector.broadcast %cst_6 : f32 to vector<1x32x1xf32>
    %13 = arith.mulf %9, %12 : vector<1x32x1xf32>
    %14 = arith.mulf %11, %11 : vector<1x32x1xf32>
    %15 = arith.subf %13, %14 : vector<1x32x1xf32>
    %c0_7 = arith.constant 0 : index
    %c0_8 = arith.constant 0 : index
    %16 = vector.load %arg1[%c0_7, %c0_8] : memref<32x1xf32, #tpu.memory_space<vmem>>, vector<32x1xf32>
    %17 = vector.shape_cast %16 : vector<32x1xf32> to vector<1x32x1xf32>
    %cst_9 = arith.constant 9.99999974E-6 : f32
    %18 = vector.broadcast %cst_9 : f32 to vector<1x32x1xf32>
    %19 = arith.addf %15, %18 : vector<1x32x1xf32>
    %20 = math.rsqrt %19 : vector<1x32x1xf32>
    %21 = arith.mulf %17, %20 : vector<1x32x1xf32>
    %c0_10 = arith.constant 0 : index
    %c0_11 = arith.constant 0 : index
    %22 = vector.load %arg2[%c0_10, %c0_11] : memref<32x1xf32, #tpu.memory_space<vmem>>, vector<32x1xf32>
    %23 = vector.shape_cast %22 : vector<32x1xf32> to vector<1x32x1xf32>
    %24 = arith.mulf %11, %21 : vector<1x32x1xf32>
    %25 = arith.subf %23, %24 : vector<1x32x1xf32>
    %26 = vector.broadcast %21 : vector<1x32x1xf32> to vector<2x32x128xf32>
    %27 = arith.mulf %0, %26 : vector<2x32x128xf32>
    %28 = vector.broadcast %25 : vector<1x32x1xf32> to vector<2x32x128xf32>
    %29 = arith.addf %27, %28 : vector<2x32x128xf32>
    %cst_12 = arith.constant 0.000000e+00 : f32
    %30 = vector.broadcast %cst_12 : f32 to vector<2x32x128xf32>
    %31 = arith.maximumf %29, %30 : vector<2x32x128xf32>
    %c0_13 = arith.constant 0 : index
    %c0_14 = arith.constant 0 : index
    %c0_15 = arith.constant 0 : index
    %32 = vector.load %arg3[%c0_13, %c0_14, %c0_15] : memref<2x16x32xf32, #tpu.memory_space<vmem>>, vector<2x16x32xf32>
    "tpu.trace_start"() <{level = 10 : i32, message = "boi,bin->bon"}> : () -> ()
    %cst_16 = arith.constant dense<0.000000e+00> : vector<2x16x128xf32>
    %33 = tpu.matmul %32, %31, %cst_16 {dimension_numbers = #tpu.dot_dimension_numbers<[2], [1], [1], [2], [0, 0, 0, 1, 1, 2], [0], [0]>, precision = #tpu.contract_precision<fp32>} : vector<2x16x32xf32>, vector<2x32x128xf32>, vector<2x16x128xf32> -> vector<2x16x128xf32>
    "tpu.trace_stop"() : () -> ()
    %c0_17 = arith.constant 0 : index
    %c0_18 = arith.constant 0 : index
    %34 = vector.load %arg4[%c0_17, %c0_18] : memref<16x1xf32, #tpu.memory_space<vmem>>, vector<16x1xf32>
    %35 = vector.shape_cast %34 : vector<16x1xf32> to vector<1x16x1xf32>
    %36 = vector.broadcast %35 : vector<1x16x1xf32> to vector<2x16x128xf32>
    %37 = arith.addf %33, %36 : vector<2x16x128xf32>
    %cst_19 = arith.constant dense<0.000000e+00> : vector<2x16xf32>
    %38 = vector.multi_reduction <add>, %37, %cst_19 [2] : vector<2x16x128xf32> to vector<2x16xf32>
    %39 = vector.shape_cast %38 : vector<2x16xf32> to vector<2x16x1xf32>
    %cst_20 = arith.constant dense<0.000000e+00> : vector<16x1xf32>
    %40 = vector.multi_reduction <add>, %39, %cst_20 [0] : vector<2x16x1xf32> to vector<16x1xf32>
    %41 = vector.shape_cast %40 : vector<16x1xf32> to vector<1x16x1xf32>
    %42 = arith.mulf %37, %37 : vector<2x16x128xf32>
    %cst_21 = arith.constant dense<0.000000e+00> : vector<2x16xf32>
    %43 = vector.multi_reduction <add>, %42, %cst_21 [2] : vector<2x16x128xf32> to vector<2x16xf32>
    %44 = vector.shape_cast %43 : vector<2x16xf32> to vector<2x16x1xf32>
    %cst_22 = arith.constant dense<0.000000e+00> : vector<16x1xf32>
    %45 = vector.multi_reduction <add>, %44, %cst_22 [0] : vector<2x16x1xf32> to vector<16x1xf32>
    %46 = vector.shape_cast %45 : vector<16x1xf32> to vector<1x16x1xf32>
    %cst_23 = arith.constant 3.906250e-03 : f32
    %47 = vector.broadcast %cst_23 : f32 to vector<1x16x1xf32>
    %48 = arith.mulf %41, %47 : vector<1x16x1xf32>
    %cst_24 = arith.constant 3.906250e-03 : f32
    %49 = vector.broadcast %cst_24 : f32 to vector<1x16x1xf32>
    %50 = arith.mulf %46, %49 : vector<1x16x1xf32>
    %51 = arith.mulf %48, %48 : vector<1x16x1xf32>
    %52 = arith.subf %50, %51 : vector<1x16x1xf32>
    %c0_25 = arith.constant 0 : index
    %c0_26 = arith.constant 0 : index
    %53 = vector.load %arg5[%c0_25, %c0_26] : memref<16x1xf32, #tpu.memory_space<vmem>>, vector<16x1xf32>
    %54 = vector.shape_cast %53 : vector<16x1xf32> to vector<1x16x1xf32>
    %cst_27 = arith.constant 9.99999974E-6 : f32
    %55 = vector.broadcast %cst_27 : f32 to vector<1x16x1xf32>
    %56 = arith.addf %52, %55 : vector<1x16x1xf32>
    %57 = math.rsqrt %56 : vector<1x16x1xf32>
    %58 = arith.mulf %54, %57 : vector<1x16x1xf32>
    %c0_28 = arith.constant 0 : index
    %c0_29 = arith.constant 0 : index
    %59 = vector.load %arg6[%c0_28, %c0_29] : memref<16x1xf32, #tpu.memory_space<vmem>>, vector<16x1xf32>
    %60 = vector.shape_cast %59 : vector<16x1xf32> to vector<1x16x1xf32>
    %61 = arith.mulf %48, %58 : vector<1x16x1xf32>
    %62 = arith.subf %60, %61 : vector<1x16x1xf32>
    %63 = vector.broadcast %58 : vector<1x16x1xf32> to vector<2x16x128xf32>
    %64 = arith.mulf %37, %63 : vector<2x16x128xf32>
    %65 = vector.broadcast %62 : vector<1x16x1xf32> to vector<2x16x128xf32>
    %66 = arith.addf %64, %65 : vector<2x16x128xf32>
    %cst_30 = arith.constant 0.000000e+00 : f32
    %67 = vector.broadcast %cst_30 : f32 to vector<2x16x128xf32>
    %68 = arith.maximumf %66, %67 : vector<2x16x128xf32>
    %c0_31 = arith.constant 0 : index
    %c0_32 = arith.constant 0 : index
    %c0_33 = arith.constant 0 : index
    %69 = vector.load %arg7[%c0_31, %c0_32, %c0_33] : memref<2x32x16xf32, #tpu.memory_space<vmem>>, vector<2x32x16xf32>
    "tpu.trace_start"() <{level = 10 : i32, message = "boi,bin->bon"}> : () -> ()
    %cst_34 = arith.constant dense<0.000000e+00> : vector<2x32x128xf32>
    %70 = tpu.matmul %69, %68, %cst_34 {dimension_numbers = #tpu.dot_dimension_numbers<[2], [1], [1], [2], [0, 0, 0, 1, 1, 2], [0], [0]>, precision = #tpu.contract_precision<fp32>} : vector<2x32x16xf32>, vector<2x16x128xf32>, vector<2x32x128xf32> -> vector<2x32x128xf32>
    "tpu.trace_stop"() : () -> ()
    %c0_35 = arith.constant 0 : index
    %c0_36 = arith.constant 0 : index
    %71 = vector.load %arg8[%c0_35, %c0_36] : memref<32x1xf32, #tpu.memory_space<vmem>>, vector<32x1xf32>
    %72 = vector.shape_cast %71 : vector<32x1xf32> to vector<1x32x1xf32>
    %73 = vector.broadcast %72 : vector<1x32x1xf32> to vector<2x32x128xf32>
    %74 = arith.addf %70, %73 : vector<2x32x128xf32>
    %cst_37 = arith.constant dense<0xFF800000> : vector<2x32xf32>
    %75 = vector.multi_reduction <maximumf>, %74, %cst_37 [2] : vector<2x32x128xf32> to vector<2x32xf32>
    %76 = vector.shape_cast %75 : vector<2x32xf32> to vector<2x32x1xf32>
    %77 = vector.broadcast %76 : vector<2x32x1xf32> to vector<2x32x128xf32>
    %78 = arith.subf %74, %77 : vector<2x32x128xf32>
    %c0_38 = arith.constant 0 : index
    %c0_39 = arith.constant 0 : index
    %79 = vector.load %arg9[%c0_38, %c0_39] : memref<32x32xf32, #tpu.memory_space<vmem>>, vector<32x32xf32>
    %cst_40 = arith.constant dense<0.000000e+00> : vector<2x32xf32>
    %80 = tpu.matmul %75, %79, %cst_40 {dimension_numbers = #tpu.dot_dimension_numbers<[1], [0], [0], [1], [0, 0, 1, 1], [], []>, precision = #tpu.contract_precision<fp32>} : vector<2x32xf32>, vector<32x32xf32>, vector<2x32xf32> -> vector<2x32xf32>
    %c0_41 = arith.constant 0 : index
    %c0_42 = arith.constant 0 : index
    %81 = vector.load %arg10[%c0_41, %c0_42] : memref<1x32xf32, #tpu.memory_space<vmem>>, vector<1x32xf32>
    %82 = vector.broadcast %81 : vector<1x32xf32> to vector<2x32xf32>
    %83 = arith.addf %80, %82 : vector<2x32xf32>
    %cst_43 = arith.constant 0.000000e+00 : f32
    %84 = vector.broadcast %cst_43 : f32 to vector<2x32xf32>
    %85 = arith.maximumf %83, %84 : vector<2x32xf32>
    %c0_44 = arith.constant 0 : index
    %c0_45 = arith.constant 0 : index
    %86 = vector.load %arg11[%c0_44, %c0_45] : memref<32x32xf32, #tpu.memory_space<vmem>>, vector<32x32xf32>
    %cst_46 = arith.constant dense<0.000000e+00> : vector<2x32xf32>
    %87 = tpu.matmul %85, %86, %cst_46 {dimension_numbers = #tpu.dot_dimension_numbers<[1], [0], [0], [1], [0, 0, 1, 1], [], []>, precision = #tpu.contract_precision<fp32>} : vector<2x32xf32>, vector<32x32xf32>, vector<2x32xf32> -> vector<2x32xf32>
    %c0_47 = arith.constant 0 : index
    %c0_48 = arith.constant 0 : index
    %88 = vector.load %arg12[%c0_47, %c0_48] : memref<1x32xf32, #tpu.memory_space<vmem>>, vector<1x32xf32>
    %89 = vector.broadcast %88 : vector<1x32xf32> to vector<2x32xf32>
    %90 = arith.addf %87, %89 : vector<2x32xf32>
    %c0_49 = arith.constant 0 : index
    %c0_50 = arith.constant 0 : index
    %c0_51 = arith.constant 0 : index
    %91 = vector.load %arg13[%c0_49, %c0_50, %c0_51] : memref<2x32x32xf32, #tpu.memory_space<vmem>>, vector<2x32x32xf32>
    "tpu.trace_start"() <{level = 10 : i32, message = "boi,bin->bon"}> : () -> ()
    %cst_52 = arith.constant dense<0.000000e+00> : vector<2x32x128xf32>
    %92 = tpu.matmul %91, %78, %cst_52 {dimension_numbers = #tpu.dot_dimension_numbers<[2], [1], [1], [2], [0, 0, 0, 1, 1, 2], [0], [0]>, precision = #tpu.contract_precision<fp32>} : vector<2x32x32xf32>, vector<2x32x128xf32>, vector<2x32x128xf32> -> vector<2x32x128xf32>
    "tpu.trace_stop"() : () -> ()
    %c0_53 = arith.constant 0 : index
    %c0_54 = arith.constant 0 : index
    %93 = vector.load %arg14[%c0_53, %c0_54] : memref<32x1xf32, #tpu.memory_space<vmem>>, vector<32x1xf32>
    %94 = vector.shape_cast %93 : vector<32x1xf32> to vector<1x32x1xf32>
    %95 = vector.broadcast %94 : vector<1x32x1xf32> to vector<2x32x128xf32>
    %96 = arith.addf %92, %95 : vector<2x32x128xf32>
    %c0_55 = arith.constant 0 : index
    %c0_56 = arith.constant 0 : index
    %97 = vector.load %arg15[%c0_55, %c0_56] : memref<32x32xf32, #tpu.memory_space<vmem>>, vector<32x32xf32>
    %cst_57 = arith.constant dense<0.000000e+00> : vector<2x32xf32>
    %98 = tpu.matmul %90, %97, %cst_57 {dimension_numbers = #tpu.dot_dimension_numbers<[1], [0], [0], [1], [0, 0, 1, 1], [], []>, precision = #tpu.contract_precision<fp32>} : vector<2x32xf32>, vector<32x32xf32>, vector<2x32xf32> -> vector<2x32xf32>
    %c0_58 = arith.constant 0 : index
    %c0_59 = arith.constant 0 : index
    %99 = vector.load %arg16[%c0_58, %c0_59] : memref<1x32xf32, #tpu.memory_space<vmem>>, vector<1x32xf32>
    %100 = vector.broadcast %99 : vector<1x32xf32> to vector<2x32xf32>
    %101 = arith.addf %98, %100 : vector<2x32xf32>
    %102 = vector.shape_cast %101 : vector<2x32xf32> to vector<2x32x1xf32>
    %103 = vector.broadcast %102 : vector<2x32x1xf32> to vector<2x32x128xf32>
    %104 = arith.addf %96, %103 : vector<2x32x128xf32>
    %cst_60 = arith.constant dense<0.000000e+00> : vector<2x32xf32>
    %105 = vector.multi_reduction <add>, %104, %cst_60 [2] : vector<2x32x128xf32> to vector<2x32xf32>
    %106 = vector.shape_cast %105 : vector<2x32xf32> to vector<2x32x1xf32>
    %cst_61 = arith.constant dense<0.000000e+00> : vector<32x1xf32>
    %107 = vector.multi_reduction <add>, %106, %cst_61 [0] : vector<2x32x1xf32> to vector<32x1xf32>
    %108 = vector.shape_cast %107 : vector<32x1xf32> to vector<1x32x1xf32>
    %109 = arith.mulf %104, %104 : vector<2x32x128xf32>
    %cst_62 = arith.constant dense<0.000000e+00> : vector<2x32xf32>
    %110 = vector.multi_reduction <add>, %109, %cst_62 [2] : vector<2x32x128xf32> to vector<2x32xf32>
    %111 = vector.shape_cast %110 : vector<2x32xf32> to vector<2x32x1xf32>
    %cst_63 = arith.constant dense<0.000000e+00> : vector<32x1xf32>
    %112 = vector.multi_reduction <add>, %111, %cst_63 [0] : vector<2x32x1xf32> to vector<32x1xf32>
    %113 = vector.shape_cast %112 : vector<32x1xf32> to vector<1x32x1xf32>
    %cst_64 = arith.constant 3.906250e-03 : f32
    %114 = vector.broadcast %cst_64 : f32 to vector<1x32x1xf32>
    %115 = arith.mulf %108, %114 : vector<1x32x1xf32>
    %cst_65 = arith.constant 3.906250e-03 : f32
    %116 = vector.broadcast %cst_65 : f32 to vector<1x32x1xf32>
    %117 = arith.mulf %113, %116 : vector<1x32x1xf32>
    %118 = arith.mulf %115, %115 : vector<1x32x1xf32>
    %119 = arith.subf %117, %118 : vector<1x32x1xf32>
    %c0_66 = arith.constant 0 : index
    %c0_67 = arith.constant 0 : index
    %120 = vector.load %arg17[%c0_66, %c0_67] : memref<32x1xf32, #tpu.memory_space<vmem>>, vector<32x1xf32>
    %121 = vector.shape_cast %120 : vector<32x1xf32> to vector<1x32x1xf32>
    %cst_68 = arith.constant 9.99999974E-6 : f32
    %122 = vector.broadcast %cst_68 : f32 to vector<1x32x1xf32>
    %123 = arith.addf %119, %122 : vector<1x32x1xf32>
    %124 = math.rsqrt %123 : vector<1x32x1xf32>
    %125 = arith.mulf %121, %124 : vector<1x32x1xf32>
    %c0_69 = arith.constant 0 : index
    %c0_70 = arith.constant 0 : index
    %126 = vector.load %arg18[%c0_69, %c0_70] : memref<32x1xf32, #tpu.memory_space<vmem>>, vector<32x1xf32>
    %127 = vector.shape_cast %126 : vector<32x1xf32> to vector<1x32x1xf32>
    %128 = arith.mulf %115, %125 : vector<1x32x1xf32>
    %129 = arith.subf %127, %128 : vector<1x32x1xf32>
    %130 = vector.broadcast %125 : vector<1x32x1xf32> to vector<2x32x128xf32>
    %131 = arith.mulf %104, %130 : vector<2x32x128xf32>
    %132 = vector.broadcast %129 : vector<1x32x1xf32> to vector<2x32x128xf32>
    %133 = arith.addf %131, %132 : vector<2x32x128xf32>
    %c0_71 = arith.constant 0 : index
    %c0_72 = arith.constant 0 : index
    %c0_73 = arith.constant 0 : index
    %134 = vector.load %arg19[%c0_71, %c0_72, %c0_73] : memref<2x32x128xf32, #tpu.memory_space<vmem>>, vector<2x32x128xf32>
    tpu.vector_store %arg19[%c0_71, %c0_72, %c0_73], %133 {strides = array<i32>} : memref<2x32x128xf32, #tpu.memory_space<vmem>>, vector<2x32x128xf32>,
    %c0_74 = arith.constant 0 : index
    %c0_75 = arith.constant 0 : index
    %135 = vector.load %arg20[%c0_74, %c0_75] : memref<2x32xf32, #tpu.memory_space<vmem>>, vector<2x32xf32>
    tpu.vector_store %arg20[%c0_74, %c0_75], %90 {strides = array<i32>} : memref<2x32xf32, #tpu.memory_space<vmem>>, vector<2x32xf32>,
    return
  }
}

</mosaic_0001>

<bundles_post_ra>
// kernel: dss_layer_forward.1
= control target key start
LH: loop header
LB: loop body
LE: loop exit
PB: predicated region body
PF: predicated region fallthrough
CT: control target
= control target key end

     0   :  { %s3998_s0 = inlined_call_operand.vmem [shape: f32[2,32,128], index: 0, kind: input, shape index: {}]   ;;  %s3999_s1 = inlined_call_operand.vmem [shape: f32[32,1], index: 1, kind: input, shape index: {}]   ;;  %s4000_s2 = inlined_call_operand.vmem [shape: f32[32,1], index: 2, kind: input, shape index: {}]   ;;  %s4001_s3 = inlined_call_operand.vmem [shape: f32[2,16,32], index: 3, kind: input, shape index: {}]   ;;  %s4002_s4 = inlined_call_operand.vmem [shape: f32[16,1], index: 4, kind: input, shape index: {}]   ;;  %s4003_s5 = inlined_call_operand.vmem [shape: f32[16,1], index: 5, kind: input, shape index: {}]   ;;  %s4004_s6 = inlined_call_operand.vmem [shape: f32[16,1], index: 6, kind: input, shape index: {}]   ;;  %s4005_s7 = inlined_call_operand.vmem [shape: f32[2,32,16], index: 7, kind: input, shape index: {}]   ;;  %s4006_s8 = inlined_call_operand.vmem [shape: f32[32,1], index: 8, kind: input, shape index: {}]   ;;  %s4007_s9 = inlined_call_operand.vmem [shape: f32[32,32], index: 9, kind: input, shape index: {}]   ;;  %s4008_s10 = inlined_call_operand.vmem [shape: f32[1,32], index: 10, kind: input, shape index: {}]   ;;  %s4009_s11 = inlined_call_operand.vmem [shape: f32[32,32], index: 11, kind: input, shape index: {}]   ;;  %s4010_s12 = inlined_call_operand.vmem [shape: f32[1,32], index: 12, kind: input, shape index: {}]   ;;  %s4011_s13 = inlined_call_operand.vmem [shape: f32[2,32,32], index: 13, kind: input, shape index: {}]   ;;  %s4012_s14 = inlined_call_operand.vmem [shape: f32[32,1], index: 14, kind: input, shape index: {}]   ;;  %s4013_s15 = inlined_call_operand.vmem [shape: f32[32,32], index: 15, kind: input, shape index: {}]   ;;  %s4014_s16 = inlined_call_operand.vmem [shape: f32[1,32], index: 16, kind: input, shape index: {}]   ;;  %s4015_s17 = inlined_call_operand.vmem [shape: f32[32,1], index: 17, kind: input, shape index: {}]   ;;  %s4016_s18 = inlined_call_operand.vmem [shape: f32[32,1], index: 18, kind: input, shape index: {}]   ;;  %s4017_s19 = inlined_call_operand.hbm [shape: f32[2,32,128], index: 19, kind: output, shape index: {0}]   ;;  %s4018_s20 = inlined_call_operand.hbm [shape: f32[2,32], index: 20, kind: output, shape index: {1}]  }
   0x1   :  { %4024 = sst [smem:[#allocation8_spill]] %s3998_s0 }
   0x2   :  { %4025 = sst [smem:[#allocation9_spill]] %s3999_s1 }
   0x3   :  { %4026 = sst [smem:[#allocation10_spill]] %s4000_s2 }
   0x4   :  { %4027 = sst [smem:[#allocation11_spill]] %s4001_s3 }
   0x5   :  { %4028 = sst [smem:[#allocation12_spill]] %s4002_s4 }
   0x6   :  { %26 = vsyncpa [#allocation3], 0  ;;  %s4029_s23 = sld [smem:[#allocation8_spill]] }
   0xc   :  { %v3133_v0 = vld [vmem:[%s4029_s23 + $0x18] sm:$0xff]  ;;  %v3138_v1 = vld [vmem:[%s4029_s23 + $0x10] sm:$0xff] }
   0xd   :  { %80 = vadd.xlane.f32.xlu0 %v3133_v0  ;;  %78 = vadd.xlane.f32.xlu1 %v3138_v1  ;;  %v97_v2 = vmul.f32 %v3133_v0, %v3133_v0 }
   0xf   :  { %108 = vadd.xlane.f32.xlu2 %v97_v2 }
  0x10   :  { %27 = vsyncpa [#allocation5], 0  ;;  %v3147_v3 = vld [vmem:[%s4029_s23 + $0x38] sm:$0xff]  ;;  %v3152_v4 = vld [vmem:[%s4029_s23 + $0x30] sm:$0xff]  ;;  %v96_v8 = vmul.f32 %v3138_v1, %v3138_v1  ;;  %v3020_v19 = vmov 0   ;;  %s4030_s2 = sld [smem:[#allocation9_spill]] }
  0x11   :  { %v101_v5 = vmul.f32 %v3147_v3, %v3147_v3  ;;  %v3161_v6 = vld [vmem:[%s4029_s23 + $0x28] sm:$0xff]  ;;  %v100_v9 = vmul.f32 %v3152_v4, %v3152_v4  ;;  %v3177_v10 = vld [vmem:[%s4029_s23] sm:$0xff]  ;;  %2931 = vset.pattern.permute.xlu1 %v3020_v19  ;;  %2933 = vset.pattern.permute.xlu0 %v3020_v19  ;;  %s4031_s26 = sld [smem:[#allocation10_spill]]  ;;  %vm282_vm12 = vcmask 261120   ;;  %s2912_s1 = sshll.u32 %s4018_s20, 4  ;;  %s2913_s1 = int_to_ptr.hbm [resolvable:$true] %s2912_s1 }
  0x12   :  { %v3166_v7 = vld [vmem:[%s4029_s23 + $0x8] sm:$0xff]  ;;  %v3182_v11 = vld [vmem:[%s4029_s23 + $0x20] sm:$0xff]  ;;  %v99_v13 = vmul.f32 %v3161_v6, %v3161_v6  ;;  %v94_v14 = vmul.f32 %v3177_v10, %v3177_v10  ;;  %2932 = vset.pattern.permute.xlu2 %v3020_v19  ;;  %s4032_s30 = sld [smem:[#allocation12_spill]]  ;;  %s2898_s25 = sshll.u32 %s4017_s19, 4  ;;  %s2899_s25 = int_to_ptr.hbm [resolvable:$true] %s2898_s25 }
  0x13   :  { %v95_v12 = vmul.f32 %v3166_v7, %v3166_v7  ;;  %v98_v15 = vmul.f32 %v3182_v11, %v3182_v11  ;;  %s4033_s0 = sld [smem:[#allocation11_spill]]  ;;  %s3024_s3 = smov 8  }
  0x15   :  { %88 = vadd.xlane.f32.xlu0 %v3147_v3  ;;  %86 = vadd.xlane.f32.xlu1 %v3152_v4 }
  0x16   :  { %v141_v53 = vld [vmem:[%s4030_s2 + $0x18] sm:$0xff] }
  0x17   :  { %116 = vadd.xlane.f32.xlu2 %v101_v5  ;;  %v193_v62 = vld [vmem:[%s4031_s26 + $0x18] sm:$0xff] }
  0x1d   :  { %84 = vadd.xlane.f32.xlu1 %v3161_v6  ;;  %76 = vadd.xlane.f32.xlu0 %v3166_v7 }
  0x1f   :  { %106 = vadd.xlane.f32.xlu2 %v96_v8 }
  0x25   :  { %114 = vadd.xlane.f32.xlu0 %v100_v9  ;;  %74 = vadd.xlane.f32.xlu1 %v3177_v10 }
  0x27   :  { %82 = vadd.xlane.f32.xlu2 %v3182_v11 }
  0x2d   :  { %104 = vadd.xlane.f32.xlu0 %v95_v12  ;;  %112 = vadd.xlane.f32.xlu1 %v99_v13 }
  0x2f   :  { %102 = vadd.xlane.f32.xlu2 %v94_v14 }
  0x35   :  { %110 = vadd.xlane.f32.xlu0 %v98_v15 }
  0x80   :  { %v81_v16 = vpop.xlane.xlu0 %80  ;;  %v79_v17 = vpop.xlane.xlu1 %78 }
  0x82   :  { %v109_v18 = vpop.xlane.xlu2 %108 }
  0x88   :  { %v89_v20 = vpop.xlane.xlu0 %88  ;;  %v87_v21 = vpop.xlane.xlu1 %86 }
  0x89   :  { %v93_v22 = vadd.f32 %v89_v20, %v81_v16  ;;  %v92_v32 = vadd.f32 %v87_v21, %v79_v17 }
  0x8a   :  { %v117_v23 = vpop.xlane.xlu2 %116 }
  0x8b   :  { %v125_v24 = vmul.f32 0.00390625, %v93_v22  ;;  %v121_v25 = vadd.f32 %v117_v23, %v109_v18  ;;  %v3197_v34 = vmul.f32 0.00390625, %v92_v32  ;;  %v192_v32 = vld [vmem:[%s4031_s26 + $0x10] sm:$0xff] }
  0x8d   :  { %v133_v26 = vmul.f32 %v125_v24, %v125_v24  ;;  %v129_v27 = vmul.f32 0.00390625, %v121_v25  ;;  %v132_v40 = vmul.f32 %v3197_v34, %v3197_v34 }
  0x8f   :  { %v137_v28 = vsub.f32 %v129_v27, %v133_v26  ;;  %v270_v27 = vld [vmem:[%s4032_s30] sm:$0xff] }
  0x90   :  { %v85_v29 = vpop.xlane.xlu1 %84  ;;  %v77_v30 = vpop.xlane.xlu0 %76 }
  0x91   :  { %v145_v31 = vadd.f32 1e-05, %v137_v28  ;;  %v91_v41 = vadd.f32 %v85_v29, %v77_v30 }
  0x92   :  { %v107_v33 = vpop.xlane.xlu2 %106 }
  0x93   :  { %2948 = vrsqrt.f32 %v145_v31  ;;  %v3201_v47 = vmul.f32 0.00390625, %v91_v41  ;;  %vm182_vm1 = vweird.f32 %v145_v31 }
  0x95   :  { %v131_v55 = vmul.f32 %v3201_v47, %v3201_v47 }
  0x98   :  { %v115_v35 = vpop.xlane.xlu0 %114  ;;  %v75_v36 = vpop.xlane.xlu1 %74 }
  0x99   :  { %v2949_v37 = vpop.eup %2948  ;;  %v120_v38 = vadd.f32 %v115_v35, %v107_v33 }
  0x9a   :  { %v177_v39 = vmul.f32 %v2949_v37, %v145_v31  ;;  %v83_v46 = vpop.xlane.xlu2 %82  ;;  %vm183_vm0 = vweird.f32 %v2949_v37 }
  0x9b   :  { %v128_v42 = vmul.f32 0.00390625, %v120_v38  ;;  %v90_v56 = vadd.f32 %v83_v46, %v75_v36  ;;  %vm184_vm2 = vmor %vm182_vm1, %vm183_vm0 }
  0x9c   :  { %v178_v43 = vmul.f32 %v2949_v37, %v177_v39  ;;  %v139_v39 = vld [vmem:[%s4030_s2 + $0x8] sm:$0xff] }
  0x9d   :  { %v136_v44 = vsub.f32 %v128_v42, %v132_v40  ;;  %v3211_v2 = vmul.f32 0.00390625, %v90_v56 }
  0x9e   :  { %v179_v45 = vmul.f32 0.5, %v178_v43 }
  0x9f   :  { %v144_v48 = vadd.f32 1e-05, %v136_v44  ;;  %v130_v16 = vmul.f32 %v3211_v2, %v3211_v2 }
  0xa0   :  { %v180_v49 = vsub.f32 1.5, %v179_v45  ;;  %v105_v50 = vpop.xlane.xlu0 %104  ;;  %v113_v51 = vpop.xlane.xlu1 %112 }
  0xa1   :  { %2950 = vrsqrt.f32 %v144_v48  ;;  %v119_v52 = vadd.f32 %v113_v51, %v105_v50  ;;  %vm172_vm4 = vweird.f32 %v144_v48 }
  0xa2   :  { %v181_v54 = vmul.f32 %v2949_v37, %v180_v49  ;;  %v103_v61 = vpop.xlane.xlu2 %102  ;;  %v138_v49 = vld [vmem:[%s4030_s2] sm:$0xff] }
  0xa3   :  { %v127_v57 = vmul.f32 0.00390625, %v119_v52 }
  0xa4   :  { %v185_v58 = vsel %vm184_vm2, %v2949_v37, %v181_v54  ;;  %v190_v54 = vld [vmem:[%s4031_s26] sm:$0xff] }
  0xa5   :  { %v135_v59 = vsub.f32 %v127_v57, %v131_v55  ;;  %v189_v60 = vmul.f32 %v185_v58, %v141_v53  ;;  %v271_v53 = vld [vmem:[%s4032_s30 + $0x8] sm:$0xff] }
  0xa7   :  { %v2951_v63 = vpop.eup %2950  ;;  %v143_v5 = vadd.f32 1e-05, %v135_v59  ;;  %219 = vperm.xlu1 %2931, %v189_v60   ;;  %v197_v8 = vmul.f32 %v189_v60, %v125_v24  ;;  %v140_v24 = vld [vmem:[%s4030_s2 + $0x10] sm:$0xff] }
  0xa8   :  { %v167_v9 = vmul.f32 %v2951_v63, %v144_v48  ;;  %v111_v12 = vpop.xlane.xlu0 %110  ;;  %vm173_vm3 = vweird.f32 %v2951_v63 }
  0xa9   :  { %2952 = vrsqrt.f32 %v143_v5  ;;  %v118_v13 = vadd.f32 %v111_v12, %v103_v61  ;;  %v201_v14 = vsub.f32 %v193_v62, %v197_v8  ;;  %vm174_vm5 = vmor %vm172_vm4, %vm173_vm3  ;;  %vm162_vm7 = vweird.f32 %v143_v5 }
  0xaa   :  { %v168_v15 = vmul.f32 %v2951_v63, %v167_v9  ;;  %vm855_vm3 = vcmask 130048   ;;  %vm1429_vm4 = vcmask 130112  }
  0xab   :  { %v126_v17 = vmul.f32 0.00390625, %v118_v13  ;;  %247 = vperm.xlu0 %2933, %v201_v14  }
  0xac   :  { %v169_v18 = vmul.f32 0.5, %v168_v15 }
  0xad   :  { %v134_v20 = vsub.f32 %v126_v17, %v130_v16 }
  0xae   :  { %v170_v21 = vsub.f32 1.5, %v169_v18 }
  0xaf   :  { %v2953_v22 = vpop.eup %2952  ;;  %v142_v23 = vadd.f32 1e-05, %v134_v20 }
  0xb0   :  { %v157_v25 = vmul.f32 %v2953_v22, %v143_v5  ;;  %v171_v26 = vmul.f32 %v2951_v63, %v170_v21  ;;  %vm163_vm6 = vweird.f32 %v2953_v22 }
  0xb1   :  { %2954 = vrsqrt.f32 %v142_v23  ;;  %vm164_vm8 = vmor %vm162_vm7, %vm163_vm6  ;;  %vm152_vm10 = vweird.f32 %v142_v23  ;;  %vm1437_vm6 = vcmask 261312   ;;  %vm1446_vm7 = vcmask 1041409  }
  0xb2   :  { %v158_v28 = vmul.f32 %v2953_v22, %v157_v25  ;;  %v175_v29 = vsel %vm174_vm5, %v2951_v63, %v171_v26  ;;  %vm1433_vm5 = vcmask 195712  }
  0xb3   :  { %v188_v30 = vmul.f32 %v175_v29, %v140_v24  ;;  %274 = vperm.xlu0 %2933, %v270_v27  }
  0xb4   :  { %v159_v31 = vmul.f32 0.5, %v158_v28 }
  0xb5   :  { %214 = vperm.xlu2 %2932, %v188_v30   ;;  %v196_v33 = vmul.f32 %v188_v30, %v3197_v34  ;;  %v191_v34 = vld [vmem:[%s4031_s26 + $0x8] sm:$0xff] }
  0xb6   :  { %v160_v35 = vsub.f32 1.5, %v159_v31 }
  0xb7   :  { %v2955_v36 = vpop.eup %2954  ;;  %v200_v37 = vsub.f32 %v192_v32, %v196_v33 }
  0xb8   :  { %v147_v38 = vmul.f32 %v2955_v36, %v142_v23  ;;  %v161_v40 = vmul.f32 %v2953_v22, %v160_v35  ;;  %vm153_vm9 = vweird.f32 %v2955_v36 }
  0xb9   :  { %242 = vperm.xlu1 %2931, %v200_v37   ;;  %vm154_vm11 = vmor %vm152_vm10, %vm153_vm9 }
  0xba   :  { %v148_v41 = vmul.f32 %v2955_v36, %v147_v38  ;;  %v165_v42 = vsel %vm164_vm8, %v2953_v22, %v161_v40  ;;  %vm2890_vm8 = vcmask 254976  }
  0xbb   :  { %v187_v43 = vmul.f32 %v165_v42, %v139_v39 }
  0xbc   :  { %v149_v44 = vmul.f32 0.5, %v148_v41 }
  0xbd   :  { %209 = vperm.xlu2 %2932, %v187_v43   ;;  %v195_v45 = vmul.f32 %v187_v43, %v3201_v47 }
  0xbe   :  { %v150_v46 = vsub.f32 1.5, %v149_v44 }
  0xbf   :  { %v199_v48 = vsub.f32 %v191_v34, %v195_v45 }
  0xc0   :  { %v151_v50 = vmul.f32 %v2955_v36, %v150_v46 }
  0xc1   :  { %237 = vperm.xlu1 %2931, %v199_v48  }
  0xc2   :  { %v155_v51 = vsel %vm154_vm11, %v2955_v36, %v151_v50 }
  0xc3   :  { %v186_v52 = vmul.f32 %v155_v51, %v138_v49 }
  0xc5   :  { %204 = vperm.xlu2 %2932, %v186_v52   ;;  %v194_v47 = vmul.f32 %v186_v52, %v3211_v2  ;;  %v266_v2 = vld [vmem:[%s4033_s0] sm:$0xff] }
  0xc7   :  { %v198_v55 = vsub.f32 %v190_v54, %v194_v47 }
  0xc9   :  { %279 = vperm.xlu1 %2931, %v271_v53  }
  0xcd   :  { %232 = vperm.xlu2 %2932, %v198_v55  }
 0x10f   :  { %v215_v56 = vpop.permute.xlu2 %214 }
 0x110   :  { %v224_v20 = vmul.f32 %v215_v56, %v3138_v1  ;;  %v228_v21 = vmul.f32 %v215_v56, %v3152_v4 }
 0x117   :  { %v210_v57 = vpop.permute.xlu2 %209 }
 0x118   :  { %v223_v37 = vmul.f32 %v210_v57, %v3166_v7  ;;  %v227_v38 = vmul.f32 %v210_v57, %v3161_v6 }
 0x119   :  { %v220_v58 = vpop.permute.xlu1 %219 }
 0x11a   :  { %v225_v59 = vmul.f32 %v220_v58, %v3133_v0  ;;  %v229_v5 = vmul.f32 %v220_v58, %v3147_v3  ;;  %v284_v3 = vsel %vm282_vm12, %v266_v2, 0  ;;  %v268_v58 = vld [vmem:[%s4033_s0 + $0x10] sm:$0xff] }
 0x11b   :  { %v3262_v18 = vand.u32 4294901760, %v284_v3 }
 0x11d   :  { %v248_v60 = vpop.permute.xlu0 %247  ;;  %v3269_v28 = vsub.f32 %v284_v3, %v3262_v18 }
 0x11e   :  { %v253_v61 = vadd.f32 %v248_v60, %v225_v59  ;;  %v257_v9 = vadd.f32 %v248_v60, %v229_v5 }
 0x11f   :  { %v205_v62 = vpop.permute.xlu2 %204  ;;  %v311_v36 = vand.u32 4294901760, %v3269_v28 }
 0x120   :  { %v261_v63 = vmax.f32 %v253_v61, 0.0  ;;  %v265_v14 = vmax.f32 %v257_v9, 0.0  ;;  %v222_v15 = vmul.f32 %v205_v62, %v3177_v10  ;;  %v226_v17 = vmul.f32 %v205_v62, %v3182_v11  ;;  %v267_v11 = vld [vmem:[%s4033_s0 + $0x8] sm:$0xff] }
 0x121   :  { %v287_v35 = vsel %vm282_vm12, %v267_v11, 0  ;;  %v312_v46 = vsub.f32 %v3269_v28, %v311_v36  ;;  %v506_v9 = vsel %vm282_vm12, %v268_v58, 0 }
 0x122   :  { %v3244_v8 = vand.u32 4294901760, %v261_v63  ;;  %v3266_v26 = vand.u32 4294901760, %v265_v14  ;;  %v3295_v44 = vand.u32 4294901760, %v287_v35 }
 0x123   :  { %v313_v59 = vand.u32 4294901760, %v312_v46 }
 0x124   :  { %302 = vmatpush.msra.mxu0 %v3244_v8  ;;  %419 = vmatpush.msra.mxu3 %v3244_v8  ;;  %v3252_v0 = vsub.f32 %v261_v63, %v3244_v8  ;;  %v3275_v31 = vsub.f32 %v265_v14, %v3266_v26  ;;  %v3305_v47 = vsub.f32 %v287_v35, %v3295_v44 }
 0x126   :  { %385 = vmatpush.msra.mxu2 %v3252_v0  ;;  %v340_v12 = vand.u32 4294901760, %v3252_v0  ;;  %v562_v45 = vand.u32 4294901760, %v3275_v31  ;;  %v319_v2 = vand.u32 4294901760, %v3305_v47 }
 0x127   :  { %v233_v13 = vpop.permute.xlu2 %232 }
 0x128   :  { %v341_v16 = vsub.f32 %v3252_v0, %v340_v12  ;;  %v250_v22 = vadd.f32 %v233_v13, %v222_v15  ;;  %v254_v25 = vadd.f32 %v233_v13, %v226_v17  ;;  %v563_v57 = vsub.f32 %v3275_v31, %v562_v45 }
 0x12a   :  { %v342_v23 = vand.u32 4294901760, %v341_v16  ;;  %v258_v29 = vmax.f32 %v250_v22, 0.0  ;;  %v262_v4 = vmax.f32 %v254_v25, 0.0  ;;  %v564_v3 = vand.u32 4294901760, %v563_v57  ;;  %v269_v25 = vld [vmem:[%s4033_s0 + $0x18] sm:$0xff]  ;;  %s3021_s0 = smov [#allocation4]  }
 0x12b   :  { %v243_v24 = vpop.permute.xlu1 %242  ;;  %v509_v11 = vsel %vm282_vm12, %v269_v25, 0  ;;  %s2910_s26 = sshll.u32 %s3021_s0, 4  ;;  %s2911_s26 = int_to_ptr.vmem [resolvable:$true] %s2910_s26 }
 0x12c   :  { %v252_v27 = vadd.f32 %v243_v24, %v224_v20  ;;  %v256_v10 = vadd.f32 %v243_v24, %v228_v21  ;;  %343 = vmatpush.msra.mxu1 %v342_v23  ;;  %v3285_v39 = vand.u32 4294901760, %v258_v29  ;;  %v3290_v41 = vand.u32 4294901760, %v262_v4 }
 0x12d   :  { %v3335_v20 = vand.u32 4294901760, %v506_v9  ;;  %v320_v23 = vsub.f32 %v3305_v47, %v319_v2 }
 0x12e   :  { %v260_v1 = vmax.f32 %v252_v27, 0.0  ;;  %v264_v30 = vmax.f32 %v256_v10, 0.0  ;;  %v357_v51 = vsub.f32 %v258_v29, %v3285_v39  ;;  %v3301_v52 = vsub.f32 %v262_v4, %v3290_v41 }
 0x12f   :  { %v532_v27 = vsub.f32 %v506_v9, %v3335_v20 }
 0x130   :  { %v3277_v32 = vand.u32 4294901760, %v260_v1  ;;  %v3279_v33 = vand.u32 4294901760, %v264_v30  ;;  %v358_v62 = vand.u32 4294901760, %v357_v51  ;;  %v580_v5 = vand.u32 4294901760, %v3301_v52 }
 0x131   :  { %v533_v29 = vand.u32 4294901760, %v532_v27 }
 0x132   :  { %304 = vmatpush.msra.mxu0 %v3277_v32  ;;  %421 = vmatpush.msra.mxu3 %v3277_v32  ;;  %v345_v40 = vsub.f32 %v260_v1, %v3277_v32  ;;  %v3293_v42 = vsub.f32 %v264_v30, %v3279_v33  ;;  %v359_v17 = vsub.f32 %v357_v51, %v358_v62  ;;  %v539_v1 = vand.u32 4294901760, %v509_v11 }
 0x133   :  { %v238_v43 = vpop.permute.xlu1 %237  ;;  %v581_v22 = vsub.f32 %v3301_v52, %v580_v5  ;;  %v534_v30 = vsub.f32 %v532_v27, %v533_v29 }
 0x134   :  { %v251_v34 = vadd.f32 %v238_v43, %v223_v37  ;;  %v255_v7 = vadd.f32 %v238_v43, %v227_v38  ;;  %388 = vmatpush.msra.mxu2 %v345_v40  ;;  %v346_v6 = vand.u32 4294901760, %v345_v40  ;;  %v568_v53 = vand.u32 4294901760, %v3293_v42 }
 0x135   :  { %v360_v24 = vand.u32 4294901760, %v359_v17  ;;  %v582_v10 = vand.u32 4294901760, %v581_v22  ;;  %v540_v4 = vsub.f32 %v509_v11, %v539_v1 }
 0x136   :  { %v259_v48 = vmax.f32 %v251_v34, 0.0  ;;  %v263_v49 = vmax.f32 %v255_v7, 0.0  ;;  %v347_v50 = vsub.f32 %v345_v40, %v346_v6  ;;  %v569_v63 = vsub.f32 %v3293_v42, %v568_v53 }
 0x138   :  { %v3307_v54 = vand.u32 4294901760, %v259_v48  ;;  %v3309_v55 = vand.u32 4294901760, %v263_v49  ;;  %v348_v56 = vand.u32 4294901760, %v347_v50  ;;  %v570_v21 = vand.u32 4294901760, %v569_v63 }
 0x13a   :  { %v3318_v60 = vsub.f32 %v263_v49, %v3309_v55  ;;  %306 = vmatpush.msra.mxu0 %v3307_v54  ;;  %349 = vmatpush.msra.mxu1 %v348_v56  ;;  %v351_v61 = vsub.f32 %v259_v48, %v3307_v54 }
 0x13b   :  { %423 = vmatpush.msra.mxu3 %v3307_v54  ;;  %v280_v7 = vpop.permute.xlu1 %279 }
 0x13c   :  { %308 = vmatpush.msra.mxu0 %v3285_v39  ;;  %391 = vmatpush.msra.mxu2 %v351_v61  ;;  %v352_v13 = vand.u32 4294901760, %v351_v61  ;;  %v574_v14 = vand.u32 4294901760, %v3318_v60 }
 0x13d   :  { %425 = vmatpush.msra.mxu3 %v3285_v39  ;;  %314 = vmatmul.f32.vlgmr.msra.gmra.mxu0 %v313_v59 }
 0x13e   :  { %454 = vmatpush.msrb.mxu0 %v340_v12  ;;  %v353_v15 = vsub.f32 %v351_v61, %v352_v13  ;;  %v575_v16 = vsub.f32 %v3318_v60, %v574_v14  ;;  %394 = vmatpush.msra.mxu2 %v357_v51 }
 0x13f   :  { %565 = vmatpush.msrb.mxu3 %v564_v3  ;;  %397 = vmatmul.f32.vlgmr.msra.gmra.mxu2 %v3269_v28  ;;  %v321_v28 = vand.u32 4294901760, %v320_v23 }
 0x140   :  { %429 = vmatmul.f32.vlgmr.msra.gmra.mxu3 %v311_v36  ;;  %458 = vmatpush.msrb.mxu0 %v346_v6  ;;  %v354_v0 = vand.u32 4294901760, %v353_v15  ;;  %v576_v12 = vand.u32 4294901760, %v575_v16 }
 0x141   :  { %524 = vmatpush.msrb.mxu2 %v3266_v26  ;;  %571 = vmatpush.msrb.mxu3 %v570_v21 }
 0x142   :  { %462 = vmatpush.msrb.mxu0 %v352_v13  ;;  %355 = vmatpush.msra.mxu1 %v354_v0 }
 0x143   :  { %526 = vmatpush.msrb.mxu2 %v3279_v33  ;;  %577 = vmatpush.msrb.mxu3 %v576_v12 }
 0x144   :  { %466 = vmatpush.msrb.mxu0 %v358_v62  ;;  %361 = vmatpush.msra.mxu1 %v360_v24 }
 0x145   :  { %528 = vmatpush.msrb.mxu2 %v3309_v55  ;;  %583 = vmatpush.msrb.mxu3 %v582_v10 }
 0x146   :  { %607 = vmatpush.msra.mxu0 %v3275_v31  ;;  %363 = vmatmul.f32.vlgmr.msra.gmra.mxu1 %v3262_v18  ;;  %v541_v31 = vand.u32 4294901760, %v540_v4 }
 0x147   :  { %322 = vmatmul.f32.gmra.mxu0 %v321_v28  ;;  %489 = vmatpush.msrb.mxu1 %v3244_v8  ;;  %v535_v8 = vand.u32 4294901760, %v534_v30 }
 0x148   :  { %530 = vmatpush.msrb.mxu2 %v3290_v41  ;;  %711 = vmatpush.msra.mxu3 %v3266_v26 }
 0x149   :  { %610 = vmatpush.msra.mxu0 %v3293_v42  ;;  %402 = vmatmul.f32.gmra.mxu2 %v3305_v47 }
 0x14a   :  { %676 = vmatpush.msra.mxu2 %v562_v45  ;;  %491 = vmatpush.msrb.mxu1 %v3277_v32  ;;  %v542_v32 = vsub.f32 %v540_v4, %v541_v31 }
 0x14b   :  { %713 = vmatpush.msra.mxu3 %v3279_v33  ;;  %613 = vmatpush.msra.mxu0 %v3318_v60 }
 0x14c   :  { %680 = vmatpush.msra.mxu2 %v568_v53  ;;  %435 = vmatmul.f32.gmra.mxu3 %v319_v2  ;;  %v543_v35 = vand.u32 4294901760, %v542_v32 }
 0x14d   :  { %493 = vmatpush.msrb.mxu1 %v3307_v54  ;;  %715 = vmatpush.msra.mxu3 %v3309_v55 }
 0x14e   :  { %616 = vmatpush.msra.mxu0 %v3301_v52  ;;  %684 = vmatpush.msra.mxu2 %v574_v14 }
 0x14f   :  { %495 = vmatpush.msrb.mxu1 %v3285_v39  ;;  %717 = vmatpush.msra.mxu3 %v3290_v41 }
 0x150   :  { %688 = vmatpush.msra.mxu2 %v580_v5  ;;  %367 = vmatmul.f32.gmra.mxu1 %v3295_v44 }
 0x151   :  { %641 = vmatpush.msra.mxu1 %v3266_v26  ;;  %468 = vmatmul.f32.vlgmr.msrb.gmra.mxu0 %v3262_v18 }
 0x152   :  { %536 = vmatmul.f32.vlgmr.msrb.gmra.mxu2 %v535_v8 }
 0x153   :  { %643 = vmatpush.msra.mxu1 %v3279_v33 }
 0x154   :  { %585 = vmatmul.f32.vlgmr.msrb.gmra.mxu3 %v3335_v20 }
 0x155   :  { %645 = vmatpush.msra.mxu1 %v3309_v55 }
 0x157   :  { %647 = vmatpush.msra.mxu1 %v3290_v41 }
 0x158   :  { %497 = vmatmul.f32.vlgmr.msrb.gmra.mxu1 %v3262_v18  ;;  %v275_v18 = vpop.permute.xlu0 %274 }
 0x159   :  { %472 = vmatmul.f32.gmra.mxu0 %v3295_v44 }
 0x15a   :  { %544 = vmatmul.f32.gmra.mxu2 %v543_v35 }
 0x15c   :  { %589 = vmatmul.f32.gmra.mxu3 %v539_v1 }
 0x160   :  { %501 = vmatmul.f32.gmra.mxu1 %v3295_v44 }
 0x161   :  { %619 = vmatmul.f32.vlgmr.msra.gmra.mxu0 %v532_v27 }
 0x162   :  { %690 = vmatmul.f32.vlgmr.msra.gmra.mxu2 %v3335_v20 }
 0x164   :  { %719 = vmatmul.f32.vlgmr.msra.gmra.mxu3 %v3335_v20 }
 0x168   :  { %651 = vmatmul.f32.vlgmr.msra.gmra.mxu1 %v533_v29 }
 0x169   :  { %624 = vmatmul.f32.gmra.mxu0 %v540_v4 }
 0x16a   :  { %694 = vmatmul.f32.gmra.mxu2 %v539_v1 }
 0x16c   :  { %723 = vmatmul.f32.gmra.mxu3 %v539_v1 }
 0x170   :  { %657 = vmatmul.f32.gmra.mxu1 %v541_v31 }
 0x1ba   :  { %v315_v26 = vpop.f32.mrf.mxu0 }
 0x1bb   :  { %v316_v39 = vadd.f32 %v315_v26, %v275_v18 }
 0x1c2   :  { %v398_v33 = vpop.f32.mrf.mxu2 }
 0x1c3   :  { %v364_v37 = vpop.f32.mrf.mxu1  ;;  %v430_v38 = vpop.f32.mrf.mxu3 }
 0x1c4   :  { %v323_v36 = vpop.f32.mrf.mxu0  ;;  %v365_v40 = vadd.f32 %v364_v37, %v316_v39 }
 0x1c5   :  { %v324_v6 = vadd.f32 %v323_v36, %v280_v7 }
 0x1c6   :  { %v399_v44 = vadd.f32 %v398_v33, %v365_v40 }
 0x1c8   :  { %v431_v45 = vadd.f32 %v430_v38, %v399_v44 }
 0x1cc   :  { %v403_v41 = vpop.f32.mrf.mxu2 }
 0x1cd   :  { %v368_v42 = vpop.f32.mrf.mxu1 }
 0x1ce   :  { %v469_v43 = vpop.f32.mrf.mxu0  ;;  %v369_v46 = vadd.f32 %v368_v42, %v324_v6 }
 0x1cf   :  { %v436_v34 = vpop.f32.mrf.mxu3  ;;  %v470_v48 = vadd.f32 %v469_v43, %v431_v45 }
 0x1d0   :  { %v404_v52 = vadd.f32 %v403_v41, %v369_v46 }
 0x1d2   :  { %v437_v54 = vadd.f32 %v436_v34, %v404_v52  ;;  %v760_v52 = vld [vmem:[%s4003_s5 + $0x8] sm:$0xff] }
 0x1d5   :  { %v537_v49 = vpop.f32.mrf.mxu2  ;;  %v498_v51 = vpop.f32.mrf.mxu1 }
 0x1d6   :  { %v473_v50 = vpop.f32.mrf.mxu0  ;;  %v3383_v53 = vadd.f32 %v498_v51, %v470_v48  ;;  %v538_v58 = vadd.f32 %v537_v49, %v275_v18 }
 0x1d7   :  { %v586_v47 = vpop.f32.mrf.mxu3  ;;  %v474_v55 = vadd.f32 %v473_v50, %v437_v54 }
 0x1d8   :  { %727 = vadd.xlane.f32.xlu0 %v3383_v53  ;;  %v737_v61 = vmul.f32 %v3383_v53, %v3383_v53  ;;  %v587_v5 = vadd.f32 %v586_v47, %v538_v58  ;;  %v786_v58 = vld [vmem:[%s4004_s6 + $0x8] sm:$0xff] }
 0x1dd   :  { %v545_v56 = vpop.f32.mrf.mxu2  ;;  %v502_v57 = vpop.f32.mrf.mxu1 }
 0x1de   :  { %v3386_v59 = vadd.f32 %v502_v57, %v474_v55  ;;  %v620_v62 = vpop.f32.mrf.mxu0  ;;  %v546_v13 = vadd.f32 %v545_v56, %v280_v7 }
 0x1df   :  { %v590_v60 = vpop.f32.mrf.mxu3  ;;  %v621_v2 = vadd.f32 %v620_v62, %v587_v5 }
 0x1e0   :  { %729 = vadd.xlane.f32.xlu2 %v3386_v59  ;;  %741 = vadd.xlane.f32.xlu0 %v737_v61  ;;  %v738_v63 = vmul.f32 %v3386_v59, %v3386_v59  ;;  %v591_v20 = vadd.f32 %v590_v60, %v546_v13  ;;  %v759_v61 = vld [vmem:[%s4003_s5] sm:$0xff]  ;;  %v832_v13 = vld [vmem:[%s4006_s8 + $0x8] sm:$0xff] }
 0x1e2   :  { %743 = vadd.xlane.f32.xlu1 %v738_v63 }
 0x1e5   :  { %v691_v9 = vpop.f32.mrf.mxu2  ;;  %v652_v3 = vpop.f32.mrf.mxu1 }
 0x1e6   :  { %v653_v14 = vadd.f32 %v652_v3, %v621_v2  ;;  %v625_v17 = vpop.f32.mrf.mxu0 }
 0x1e7   :  { %v720_v15 = vpop.f32.mrf.mxu3  ;;  %v626_v22 = vadd.f32 %v625_v17, %v591_v20  ;;  %v833_v17 = vld [vmem:[%s4006_s8 + $0x10] sm:$0xff]  ;;  %v823_v20 = vld [vmem:[%s4005_s7] sm:$0xff] }
 0x1e8   :  { %v692_v16 = vadd.f32 %v691_v9, %v653_v14  ;;  %v831_v9 = vld [vmem:[%s4006_s8] sm:$0xff] }
 0x1e9   :  { %v785_v14 = vld [vmem:[%s4004_s6] sm:$0xff] }
 0x1ea   :  { %v3393_v21 = vadd.f32 %v720_v15, %v692_v16  ;;  %v834_v16 = vld [vmem:[%s4006_s8 + $0x18] sm:$0xff] }
 0x1ec   :  { %731 = vadd.xlane.f32.xlu2 %v3393_v21  ;;  %v739_v28 = vmul.f32 %v3393_v21, %v3393_v21 }
 0x1ed   :  { %v658_v23 = vpop.f32.mrf.mxu1  ;;  %v695_v0 = vpop.f32.mrf.mxu2 }
 0x1ee   :  { %v659_v12 = vadd.f32 %v658_v23, %v626_v22  ;;  %v857_v22 = vsel %vm855_vm3, %v823_v20, 0 }
 0x1ef   :  { %v724_v25 = vpop.f32.mrf.mxu3 }
 0x1f0   :  { %v696_v24 = vadd.f32 %v695_v0, %v659_v12  ;;  %v3431_v0 = vand.u32 4294901760, %v857_v22 }
 0x1f2   :  { %v3396_v27 = vadd.f32 %v724_v25, %v696_v24 }
 0x1f4   :  { %733 = vadd.xlane.f32.xlu1 %v3396_v27  ;;  %v740_v10 = vmul.f32 %v3396_v27, %v3396_v27 }
 0x1f6   :  { %747 = vadd.xlane.f32.xlu2 %v740_v10  ;;  %v824_v10 = vld [vmem:[%s4005_s7 + $0x8] sm:$0xff] }
 0x1fc   :  { %745 = vadd.xlane.f32.xlu1 %v739_v28 }
 0x24b   :  { %v728_v30 = vpop.xlane.xlu0 %727 }
 0x253   :  { %v730_v11 = vpop.xlane.xlu2 %729  ;;  %v742_v18 = vpop.xlane.xlu0 %741 }
 0x255   :  { %v744_v29 = vpop.xlane.xlu1 %743 }
 0x25f   :  { %v732_v1 = vpop.xlane.xlu2 %731 }
 0x260   :  { %v735_v32 = vadd.f32 %v732_v1, %v728_v30  ;;  %v887_v1 = vsub.f32 %v857_v22, %v3431_v0 }
 0x262   :  { %v751_v37 = vmul.f32 0.00390625, %v735_v32 }
 0x264   :  { %v755_v42 = vmul.f32 %v751_v37, %v751_v37 }
 0x267   :  { %v734_v4 = vpop.xlane.xlu1 %733 }
 0x268   :  { %v736_v8 = vadd.f32 %v734_v4, %v730_v11 }
 0x269   :  { %v748_v31 = vpop.xlane.xlu2 %747 }
 0x26a   :  { %v752_v35 = vmul.f32 0.00390625, %v736_v8  ;;  %v750_v26 = vadd.f32 %v748_v31, %v744_v29  ;;  %v860_v8 = vsel %vm855_vm3, %v824_v10, 0 }
 0x26c   :  { %v756_v33 = vmul.f32 %v752_v35, %v752_v35  ;;  %v754_v36 = vmul.f32 0.00390625, %v750_v26 }
 0x26e   :  { %v758_v38 = vsub.f32 %v754_v36, %v756_v33  ;;  %v825_v33 = vld [vmem:[%s4005_s7 + $0x10] sm:$0xff] }
 0x26f   :  { %v746_v39 = vpop.xlane.xlu1 %745 }
 0x270   :  { %v762_v40 = vadd.f32 1e-05, %v758_v38  ;;  %v749_v41 = vadd.f32 %v746_v39, %v742_v18 }
 0x272   :  { %2956 = vrsqrt.f32 %v762_v40  ;;  %v753_v43 = vmul.f32 0.00390625, %v749_v41  ;;  %vm779_vm14 = vweird.f32 %v762_v40 }
 0x274   :  { %v757_v44 = vsub.f32 %v753_v43, %v755_v42 }
 0x276   :  { %v761_v34 = vadd.f32 1e-05, %v757_v44 }
 0x278   :  { %v2957_v7 = vpop.eup %2956  ;;  %2958 = vrsqrt.f32 %v761_v34  ;;  %vm769_vm1 = vweird.f32 %v761_v34 }
 0x279   :  { %v774_v6 = vmul.f32 %v2957_v7, %v762_v40  ;;  %vm780_vm13 = vweird.f32 %v2957_v7 }
 0x27a   :  { %vm781_vm15 = vmor %vm779_vm14, %vm780_vm13 }
 0x27b   :  { %v775_v45 = vmul.f32 %v2957_v7, %v774_v6 }
 0x27d   :  { %v776_v46 = vmul.f32 0.5, %v775_v45 }
 0x27e   :  { %v2959_v48 = vpop.eup %2958 }
 0x27f   :  { %v777_v49 = vsub.f32 1.5, %v776_v46  ;;  %v764_v50 = vmul.f32 %v2959_v48, %v761_v34  ;;  %vm770_vm0 = vweird.f32 %v2959_v48  ;;  %v863_v34 = vsel %vm855_vm3, %v825_v33, 0 }
 0x280   :  { %vm771_vm2 = vmor %vm769_vm1, %vm770_vm0 }
 0x281   :  { %v765_v51 = vmul.f32 %v2959_v48, %v764_v50  ;;  %v778_v47 = vmul.f32 %v2957_v7, %v777_v49  ;;  %v3457_v50 = vand.u32 4294901760, %v863_v34 }
 0x283   :  { %v766_v54 = vmul.f32 0.5, %v765_v51  ;;  %v782_v55 = vsel %vm781_vm15, %v2957_v7, %v778_v47 }
 0x284   :  { %v784_v56 = vmul.f32 %v782_v55, %v760_v52  ;;  %v826_v52 = vld [vmem:[%s4005_s7 + $0x18] sm:$0xff] }
 0x285   :  { %v767_v57 = vsub.f32 1.5, %v766_v54 }
 0x286   :  { %798 = vperm.xlu2 %2932, %v784_v56   ;;  %v788_v60 = vmul.f32 %v784_v56, %v752_v35  ;;  %v903_v56 = vsub.f32 %v863_v34, %v3457_v50 }
 0x287   :  { %v768_v62 = vmul.f32 %v2959_v48, %v767_v57 }
 0x288   :  { %v790_v63 = vsub.f32 %v786_v58, %v788_v60  ;;  %v866_v60 = vsel %vm855_vm3, %v826_v52, 0 }
 0x289   :  { %v772_v5 = vsel %vm771_vm2, %v2959_v48, %v768_v62 }
 0x28a   :  { %812 = vperm.xlu1 %2931, %v790_v63   ;;  %v783_v2 = vmul.f32 %v772_v5, %v759_v61  ;;  %v904_v5 = vand.u32 4294901760, %v903_v56 }
 0x28c   :  { %793 = vperm.xlu0 %2933, %v783_v2   ;;  %v787_v3 = vmul.f32 %v783_v2, %v751_v37  ;;  %v3465_v2 = vand.u32 4294901760, %v866_v60 }
 0x28e   :  { %837 = vperm.xlu2 %2932, %v831_v9   ;;  %v789_v15 = vsub.f32 %v785_v14, %v787_v3  ;;  %v911_v14 = vsub.f32 %v866_v60, %v3465_v2 }
 0x290   :  { %v912_v20 = vand.u32 4294901760, %v911_v14 }
 0x292   :  { %842 = vperm.xlu1 %2931, %v832_v13   ;;  %v905_v13 = vsub.f32 %v903_v56, %v904_v5 }
 0x294   :  { %807 = vperm.xlu0 %2933, %v789_v15   ;;  %v827_v15 = vld [vmem:[%s4005_s7 + $0x20] sm:$0xff] }
 0x296   :  { %852 = vperm.xlu2 %2932, %v834_v16   ;;  %v1121_v16 = vsel %vm855_vm3, %v827_v15, 0 }
 0x297   :  { %v1150_v22 = vand.u32 4294901760, %v1121_v16 }
 0x29c   :  { %847 = vperm.xlu0 %2933, %v833_v17   ;;  %v906_v17 = vand.u32 4294901760, %v905_v13 }
 0x2e0   :  { %v799_v23 = vpop.permute.xlu2 %798 }
 0x2e1   :  { %v802_v12 = vmul.f32 %v799_v23, %v3386_v59  ;;  %v804_v25 = vmul.f32 %v799_v23, %v3396_v27  ;;  %v888_v59 = vand.u32 4294901760, %v887_v1  ;;  %v3444_v27 = vand.u32 4294901760, %v860_v8 }
 0x2e2   :  { %v913_v23 = vsub.f32 %v911_v14, %v912_v20 }
 0x2e3   :  { %v889_v40 = vsub.f32 %v887_v1, %v888_v59  ;;  %v895_v41 = vsub.f32 %v860_v8, %v3444_v27 }
 0x2e4   :  { %v914_v10 = vand.u32 4294901760, %v913_v23 }
 0x2e5   :  { %v890_v48 = vand.u32 4294901760, %v889_v40  ;;  %v896_v49 = vand.u32 4294901760, %v895_v41 }
 0x2e7   :  { %v897_v55 = vsub.f32 %v895_v41, %v896_v49 }
 0x2e9   :  { %v898_v63 = vand.u32 4294901760, %v897_v55 }
 0x2fc   :  { %v813_v24 = vpop.permute.xlu1 %812 }
 0x2fd   :  { %v816_v28 = vadd.f32 %v813_v24, %v802_v12  ;;  %v818_v11 = vadd.f32 %v813_v24, %v804_v25  ;;  %v828_v12 = vld [vmem:[%s4005_s7 + $0x28] sm:$0xff]  ;;  %v1151_v25 = vsub.f32 %v1121_v16, %v1150_v22 }
 0x2fe   :  { %v794_v29 = vpop.permute.xlu0 %793  ;;  %v1124_v24 = vsel %vm855_vm3, %v828_v12, 0 }
 0x2ff   :  { %v820_v30 = vmax.f32 %v816_v28, 0.0  ;;  %v822_v4 = vmax.f32 %v818_v11, 0.0  ;;  %v801_v38 = vmul.f32 %v794_v29, %v3383_v53  ;;  %v803_v18 = vmul.f32 %v794_v29, %v3393_v21  ;;  %v829_v29 = vld [vmem:[%s4005_s7 + $0x30] sm:$0xff] }
 0x300   :  { %v1152_v28 = vand.u32 4294901760, %v1151_v25  ;;  %v1158_v11 = vand.u32 4294901760, %v1124_v24 }
 0x301   :  { %v3440_v31 = vand.u32 4294901760, %v820_v30  ;;  %v3442_v32 = vand.u32 4294901760, %v822_v4 }
 0x303   :  { %v934_v35 = vsub.f32 %v820_v30, %v3440_v31  ;;  %v1198_v26 = vsub.f32 %v822_v4, %v3442_v32  ;;  %883 = vmatpush.msrb.mxu0 %v3440_v31  ;;  %1018 = vmatpush.msrb.mxu3 %v3440_v31  ;;  %v1159_v30 = vsub.f32 %v1124_v24, %v1158_v11  ;;  %v1127_v4 = vsel %vm855_vm3, %v829_v29, 0 }
 0x304   :  { %v843_v60 = vpop.permute.xlu1 %842 }
 0x305   :  { %v935_v36 = vand.u32 4294901760, %v934_v35  ;;  %v1199_v37 = vand.u32 4294901760, %v1198_v26  ;;  %978 = vmatpush.msrb.mxu2 %v934_v35 }
 0x306   :  { %v808_v39 = vpop.permute.xlu0 %807 }
 0x307   :  { %v815_v42 = vadd.f32 %v808_v39, %v801_v38  ;;  %v817_v43 = vadd.f32 %v808_v39, %v803_v18  ;;  %v936_v44 = vsub.f32 %v934_v35, %v935_v36  ;;  %v1200_v7 = vsub.f32 %v1198_v26, %v1199_v37 }
 0x309   :  { %v819_v6 = vmax.f32 %v815_v42, 0.0  ;;  %v821_v45 = vmax.f32 %v817_v43, 0.0  ;;  %v937_v46 = vand.u32 4294901760, %v936_v44  ;;  %v1201_v51 = vand.u32 4294901760, %v1200_v7 }
 0x30b   :  { %v884_v53 = vand.u32 4294901760, %v819_v6  ;;  %v1148_v21 = vand.u32 4294901760, %v821_v45  ;;  %938 = vmatpush.msrb.mxu1 %v937_v46 }
 0x30d   :  { %885 = vmatpush.msrb.mxu0 %v884_v53  ;;  %1020 = vmatpush.msrb.mxu3 %v884_v53  ;;  %v940_v47 = vsub.f32 %v819_v6, %v884_v53  ;;  %v1204_v54 = vsub.f32 %v821_v45, %v1148_v21 }
 0x30e   :  { %891 = vmatmul.f32.vlgmr.msrb.gmra.mxu0 %v890_v48  ;;  %1024 = vmatmul.f32.vlgmr.msrb.gmra.mxu3 %v888_v59  ;;  %v830_v59 = vld [vmem:[%s4005_s7 + $0x38] sm:$0xff]  ;;  %v848_v16 = vpop.permute.xlu0 %847 }
 0x30f   :  { %1202 = vmatpush.msra.mxu3 %v1201_v51  ;;  %1063 = vmatpush.msra.mxu0 %v935_v36  ;;  %v941_v57 = vand.u32 4294901760, %v940_v47  ;;  %v1205_v58 = vand.u32 4294901760, %v1204_v54  ;;  %v1130_v33 = vsel %vm855_vm3, %v830_v59, 0  ;;  %v838_v51 = vpop.permute.xlu2 %837 }
 0x310   :  { %981 = vmatpush.msrb.mxu2 %v940_v47  ;;  %v1174_v38 = vand.u32 4294901760, %v1130_v33 }
 0x311   :  { %984 = vmatmul.f32.vlgmr.msrb.gmra.mxu2 %v887_v1  ;;  %1067 = vmatpush.msra.mxu0 %v941_v57  ;;  %v942_v61 = vsub.f32 %v940_v47, %v941_v57  ;;  %v1206_v62 = vsub.f32 %v1204_v54, %v1205_v58  ;;  %v1153_v1 = vsub.f32 %v1151_v25, %v1152_v28 }
 0x312   :  { %1147 = vmatpush.msra.mxu2 %v3442_v32  ;;  %v1175_v39 = vsub.f32 %v1130_v33, %v1174_v38 }
 0x313   :  { %1242 = vmatpush.msrb.mxu0 %v1198_v26  ;;  %v943_v9 = vand.u32 4294901760, %v942_v61  ;;  %v1207_v3 = vand.u32 4294901760, %v1206_v62  ;;  %v1154_v8 = vand.u32 4294901760, %v1153_v1 }
 0x314   :  { %1149 = vmatpush.msra.mxu2 %v1148_v21 }
 0x315   :  { %1245 = vmatpush.msrb.mxu0 %v1204_v54  ;;  %944 = vmatpush.msrb.mxu1 %v943_v9 }
 0x316   :  { %1327 = vmatpush.msrb.mxu2 %v1199_v37  ;;  %1208 = vmatpush.msra.mxu3 %v1207_v3 }
 0x317   :  { %899 = vmatmul.f32.gmra.mxu0 %v898_v63  ;;  %946 = vmatmul.f32.vlgmr.msrb.gmra.mxu1 %v3431_v0 }
 0x318   :  { %1331 = vmatpush.msrb.mxu2 %v1205_v58  ;;  %1364 = vmatpush.msrb.mxu3 %v3442_v32 }
 0x319   :  { %1100 = vmatpush.msra.mxu1 %v3440_v31  ;;  %989 = vmatmul.f32.gmra.mxu2 %v895_v41  ;;  %v1160_v31 = vand.u32 4294901760, %v1159_v30  ;;  %v1176_v41 = vand.u32 4294901760, %v1175_v39 }
 0x31a   :  { %1366 = vmatpush.msrb.mxu3 %v1148_v21 }
 0x31b   :  { %1102 = vmatpush.msra.mxu1 %v884_v53  ;;  %1030 = vmatmul.f32.gmra.mxu3 %v896_v49  ;;  %v1161_v35 = vsub.f32 %v1159_v30, %v1160_v31  ;;  %v1177_v42 = vsub.f32 %v1175_v39, %v1176_v41 }
 0x31d   :  { %1282 = vmatpush.msrb.mxu1 %v3442_v32  ;;  %v1166_v32 = vand.u32 4294901760, %v1127_v4  ;;  %v1162_v36 = vand.u32 4294901760, %v1161_v35  ;;  %v1178_v43 = vand.u32 4294901760, %v1177_v42 }
 0x31f   :  { %1284 = vmatpush.msrb.mxu1 %v1148_v21  ;;  %907 = vmatmul.f32.gmra.mxu0 %v906_v17  ;;  %v1167_v26 = vsub.f32 %v1127_v4, %v1166_v32 }
 0x320   :  { %950 = vmatmul.f32.gmra.mxu1 %v3444_v27 }
 0x321   :  { %994 = vmatmul.f32.gmra.mxu2 %v903_v56  ;;  %v1168_v37 = vand.u32 4294901760, %v1167_v26 }
 0x323   :  { %1036 = vmatmul.f32.gmra.mxu3 %v904_v5  ;;  %v1169_v18 = vsub.f32 %v1167_v26, %v1168_v37 }
 0x325   :  { %v1170_v40 = vand.u32 4294901760, %v1169_v18 }
 0x327   :  { %915 = vmatmul.f32.gmra.mxu0 %v914_v10 }
 0x328   :  { %954 = vmatmul.f32.gmra.mxu1 %v3457_v50 }
 0x329   :  { %999 = vmatmul.f32.gmra.mxu2 %v911_v14 }
 0x32b   :  { %1042 = vmatmul.f32.gmra.mxu3 %v912_v20 }
 0x32f   :  { %1069 = vmatmul.f32.vlgmr.msra.gmra.mxu0 %v3431_v0 }
 0x330   :  { %958 = vmatmul.f32.gmra.mxu1 %v3465_v2 }
 0x331   :  { %1155 = vmatmul.f32.vlgmr.msra.gmra.mxu2 %v1154_v8 }
 0x333   :  { %1210 = vmatmul.f32.vlgmr.msra.gmra.mxu3 %v1150_v22 }
 0x337   :  { %1073 = vmatmul.f32.gmra.mxu0 %v3444_v27 }
 0x338   :  { %1104 = vmatmul.f32.vlgmr.msra.gmra.mxu1 %v3431_v0 }
 0x339   :  { %1163 = vmatmul.f32.gmra.mxu2 %v1162_v36 }
 0x33b   :  { %1214 = vmatmul.f32.gmra.mxu3 %v1158_v11 }
 0x33f   :  { %1077 = vmatmul.f32.gmra.mxu0 %v3457_v50 }
 0x340   :  { %1108 = vmatmul.f32.gmra.mxu1 %v3444_v27 }
 0x341   :  { %1171 = vmatmul.f32.gmra.mxu2 %v1170_v40 }
 0x343   :  { %1218 = vmatmul.f32.gmra.mxu3 %v1166_v32 }
 0x347   :  { %1081 = vmatmul.f32.gmra.mxu0 %v3465_v2 }
 0x348   :  { %1112 = vmatmul.f32.gmra.mxu1 %v3457_v50 }
 0x349   :  { %1179 = vmatmul.f32.gmra.mxu2 %v1178_v43 }
 0x34b   :  { %1222 = vmatmul.f32.gmra.mxu3 %v1174_v38 }
 0x34f   :  { %1248 = vmatmul.f32.vlgmr.msrb.gmra.mxu0 %v1151_v25 }
 0x350   :  { %1116 = vmatmul.f32.gmra.mxu1 %v3465_v2 }
 0x351   :  { %1333 = vmatmul.f32.vlgmr.msrb.gmra.mxu2 %v1150_v22 }
 0x353   :  { %1368 = vmatmul.f32.vlgmr.msrb.gmra.mxu3 %v1150_v22 }
 0x357   :  { %1253 = vmatmul.f32.gmra.mxu0 %v1159_v30 }
 0x358   :  { %1288 = vmatmul.f32.vlgmr.msrb.gmra.mxu1 %v1152_v28 }
 0x359   :  { %1337 = vmatmul.f32.gmra.mxu2 %v1158_v11 }
 0x35b   :  { %1372 = vmatmul.f32.gmra.mxu3 %v1158_v11 }
 0x35f   :  { %1258 = vmatmul.f32.gmra.mxu0 %v1167_v26 }
 0x360   :  { %1294 = vmatmul.f32.gmra.mxu1 %v1160_v31 }
 0x361   :  { %1341 = vmatmul.f32.gmra.mxu2 %v1166_v32 }
 0x363   :  { %1376 = vmatmul.f32.gmra.mxu3 %v1166_v32 }
 0x367   :  { %1263 = vmatmul.f32.gmra.mxu0 %v1175_v39 }
 0x368   :  { %1300 = vmatmul.f32.gmra.mxu1 %v1168_v37 }
 0x369   :  { %1345 = vmatmul.f32.gmra.mxu2 %v1174_v38 }
 0x36b   :  { %1380 = vmatmul.f32.gmra.mxu3 %v1174_v38 }
 0x370   :  { %1306 = vmatmul.f32.gmra.mxu1 %v1176_v41 }
 0x38b   :  { %v892_v0 = vpop.f32.mrf.mxu0 }
 0x38c   :  { %v893_v52 = vadd.f32 %v892_v0, %v838_v51 }
 0x391   :  { %v1025_v7 = vpop.f32.mrf.mxu3 }
 0x394   :  { %v900_v27 = vpop.f32.mrf.mxu0  ;;  %v985_v44 = vpop.f32.mrf.mxu2 }
 0x395   :  { %v947_v34 = vpop.f32.mrf.mxu1  ;;  %v901_v61 = vadd.f32 %v900_v27, %v843_v60 }
 0x396   :  { %v948_v47 = vadd.f32 %v947_v34, %v893_v52  ;;  %v853_v34 = vpop.permute.xlu2 %852 }
 0x398   :  { %v986_v57 = vadd.f32 %v985_v44, %v948_v47 }
 0x39a   :  { %v1026_v62 = vadd.f32 %v1025_v7, %v986_v57 }
 0x39c   :  { %v908_v6 = vpop.f32.mrf.mxu0  ;;  %v990_v45 = vpop.f32.mrf.mxu2 }
 0x39d   :  { %v951_v46 = vpop.f32.mrf.mxu1  ;;  %v909_v17 = vadd.f32 %v908_v6, %v848_v16 }
 0x39e   :  { %v1031_v48 = vpop.f32.mrf.mxu3  ;;  %v952_v63 = vadd.f32 %v951_v46, %v901_v61 }
 0x3a0   :  { %v991_v13 = vadd.f32 %v990_v45, %v952_v63 }
 0x3a2   :  { %v1032_v20 = vadd.f32 %v1031_v48, %v991_v13 }
 0x3a4   :  { %v916_v49 = vpop.f32.mrf.mxu0  ;;  %v995_v50 = vpop.f32.mrf.mxu2 }
 0x3a5   :  { %v955_v53 = vpop.f32.mrf.mxu1  ;;  %v917_v7 = vadd.f32 %v916_v49, %v853_v34 }
 0x3a6   :  { %v1037_v21 = vpop.f32.mrf.mxu3  ;;  %v956_v22 = vadd.f32 %v955_v53, %v909_v17 }
 0x3a8   :  { %v996_v10 = vadd.f32 %v995_v50, %v956_v22 }
 0x3aa   :  { %v1038_v29 = vadd.f32 %v1037_v21, %v996_v10  ;;  %v1424_v10 = vlaneseq }
 0x3ac   :  { %v3499_v54 = vpop.f32.mrf.mxu2  ;;  %v1070_v55 = vpop.f32.mrf.mxu0 }
 0x3ad   :  { %v959_v56 = vpop.f32.mrf.mxu1  ;;  %v1071_v5 = vadd.f32 %v1070_v55, %v1026_v62 }
 0x3ae   :  { %v3501_v58 = vpop.f32.mrf.mxu3  ;;  %v960_v48 = vadd.f32 %v959_v56, %v917_v7 }
 0x3b0   :  { %v1001_v47 = vadd.f32 %v3499_v54, %v960_v48 }
 0x3b2   :  { %v1044_v62 = vadd.f32 %v3501_v58, %v1001_v47 }
 0x3b4   :  { %v1074_v2 = vpop.f32.mrf.mxu0  ;;  %v1156_v9 = vpop.f32.mrf.mxu2 }
 0x3b5   :  { %v1105_v3 = vpop.f32.mrf.mxu1  ;;  %v1075_v23 = vadd.f32 %v1074_v2, %v1032_v20  ;;  %v1157_v33 = vadd.f32 %v1156_v9, %v838_v51 }
 0x3b6   :  { %v1211_v14 = vpop.f32.mrf.mxu3  ;;  %v3503_v15 = vadd.f32 %v1105_v3, %v1071_v5 }
 0x3b7   :  { %v1212_v37 = vadd.f32 %v1211_v14, %v1157_v33  ;;  %v1409_v33 = vld [vmem:[%s4007_s9 + $0x8] sm:$0xff] }
 0x3b8   :  { %1384 = vmax.xlane.f32.xlu1 %v3503_v15 }
 0x3bc   :  { %v1078_v12 = vpop.f32.mrf.mxu0  ;;  %v1164_v25 = vpop.f32.mrf.mxu2 }
 0x3bd   :  { %v1109_v24 = vpop.f32.mrf.mxu1  ;;  %v1079_v1 = vadd.f32 %v1078_v12, %v1038_v29  ;;  %v1165_v41 = vadd.f32 %v1164_v25, %v843_v60  ;;  %v1840_v25 = vld [vmem:[%s4012_s14] sm:$0xff]  ;;  %v3539_v29 = vshrl.u32 %v1424_v10, 7 }
 0x3be   :  { %v3506_v28 = vadd.f32 %v1109_v24, %v1075_v23  ;;  %v1215_v11 = vpop.f32.mrf.mxu3  ;;  %v1841_v24 = vld [vmem:[%s4012_s14 + $0x8] sm:$0xff] }
 0x3bf   :  { %v1216_v27 = vadd.f32 %v1215_v11, %v1165_v41  ;;  %v1842_v11 = vld [vmem:[%s4012_s14 + $0x10] sm:$0xff] }
 0x3c0   :  { %1386 = vmax.xlane.f32.xlu0 %v3506_v28 }
 0x3c4   :  { %v1082_v30 = vpop.f32.mrf.mxu0  ;;  %v1172_v4 = vpop.f32.mrf.mxu2 }
 0x3c5   :  { %v1113_v8 = vpop.f32.mrf.mxu1  ;;  %v1173_v50 = vadd.f32 %v1172_v4, %v848_v16  ;;  %v1083_v2 = vadd.f32 %v1082_v30, %v1044_v62  ;;  %v3545_v30 = vadd.s32 8, %v3539_v29  ;;  %v3549_v4 = vadd.s32 16, %v3539_v29 }
 0x3c6   :  { %v3509_v31 = vadd.f32 %v1113_v8, %v1079_v1  ;;  %v1219_v32 = vpop.f32.mrf.mxu3  ;;  %v1843_v1 = vld [vmem:[%s4012_s14 + $0x18] sm:$0xff] }
 0x3c7   :  { %v1220_v55 = vadd.f32 %v1219_v32, %v1173_v50  ;;  %v1411_v8 = vld [vmem:[%s4007_s9 + $0x18] sm:$0xff] }
 0x3c8   :  { %1388 = vmax.xlane.f32.xlu0 %v3509_v31  ;;  %v1462_v32 = vand.u32 4294901760, %v1411_v8 }
 0x3ca   :  { %1463 = vmatpush.msra.mxu0 %v1462_v32  ;;  %1563 = vmatpush.msra.mxu3 %v1462_v32 }
 0x3cc   :  { %v1180_v59 = vpop.f32.mrf.mxu2  ;;  %v1249_v35 = vpop.f32.mrf.mxu0 }
 0x3cd   :  { %v1117_v26 = vpop.f32.mrf.mxu1  ;;  %v1250_v38 = vadd.f32 %v1249_v35, %v1212_v37  ;;  %v1181_v63 = vadd.f32 %v1180_v59, %v853_v34  ;;  %v1410_v59 = vld [vmem:[%s4007_s9 + $0x10] sm:$0xff]  ;;  %v1492_v35 = vsub.f32 %v1411_v8, %v1462_v32 }
 0x3ce   :  { %v1223_v36 = vpop.f32.mrf.mxu3  ;;  %v3520_v13 = vadd.f32 %v1117_v26, %v1083_v2  ;;  %v1464_v26 = vand.u32 4294901760, %v1410_v59 }
 0x3cf   :  { %v1224_v14 = vadd.f32 %v1223_v36, %v1181_v63  ;;  %1534 = vmatpush.msra.mxu2 %v1492_v35  ;;  %v1493_v36 = vand.u32 4294901760, %v1492_v35 }
 0x3d0   :  { %v1498_v37 = vsub.f32 %v1410_v59, %v1464_v26  ;;  %1465 = vmatpush.msra.mxu0 %v1464_v26  ;;  %1565 = vmatpush.msra.mxu3 %v1464_v26 }
 0x3d2   :  { %1537 = vmatpush.msra.mxu2 %v1498_v37 }
 0x3d4   :  { %v1334_v18 = vpop.f32.mrf.mxu2  ;;  %v1254_v39 = vpop.f32.mrf.mxu0 }
 0x3d5   :  { %v1289_v40 = vpop.f32.mrf.mxu1  ;;  %v1255_v6 = vadd.f32 %v1254_v39, %v1216_v27  ;;  %v1494_v39 = vsub.f32 %v1492_v35, %v1493_v36 }
 0x3d6   :  { %v1290_v42 = vadd.f32 %v1289_v40, %v1250_v38  ;;  %v1369_v43 = vpop.f32.mrf.mxu3  ;;  %v1466_v38 = vand.u32 4294901760, %v1409_v33  ;;  %v1499_v40 = vand.u32 4294901760, %v1498_v37 }
 0x3d8   :  { %v1335_v0 = vadd.f32 %v1334_v18, %v1290_v42  ;;  %v1408_v18 = vld [vmem:[%s4007_s9] sm:$0xff]  ;;  %v1504_v41 = vsub.f32 %v1409_v33, %v1466_v38  ;;  %1467 = vmatpush.msra.mxu0 %v1466_v38  ;;  %1567 = vmatpush.msra.mxu3 %v1466_v38 }
 0x3d9   :  { %v1468_v42 = vand.u32 4294901760, %v1408_v18 }
 0x3da   :  { %v3512_v44 = vadd.f32 %v1369_v43, %v1335_v0  ;;  %v1495_v43 = vand.u32 4294901760, %v1494_v39  ;;  %v1500_v0 = vsub.f32 %v1498_v37, %v1499_v40  ;;  %v1505_v27 = vand.u32 4294901760, %v1504_v41  ;;  %1540 = vmatpush.msra.mxu2 %v1504_v41 }
 0x3db   :  { %v1510_v34 = vsub.f32 %v1408_v18, %v1468_v42  ;;  %1469 = vmatpush.msra.mxu0 %v1468_v42  ;;  %1569 = vmatpush.msra.mxu3 %v1468_v42 }
 0x3dc   :  { %1392 = vmax.xlane.f32.xlu2 %v3512_v44  ;;  %v1338_v45 = vpop.f32.mrf.mxu2  ;;  %v1259_v51 = vpop.f32.mrf.mxu0  ;;  %1496 = vmatpush.msra.mxu1 %v1495_v43  ;;  %v1501_v7 = vand.u32 4294901760, %v1500_v0 }
 0x3dd   :  { %v1295_v46 = vpop.f32.mrf.mxu1  ;;  %v1260_v60 = vadd.f32 %v1259_v51, %v1220_v55  ;;  %1592 = vmatpush.msrb.mxu0 %v1493_v36  ;;  %1543 = vmatpush.msra.mxu2 %v1510_v34  ;;  %v3585_v55 = vld [vmem:[%s4009_s11 + $0x8] sm:$0xff] }
 0x3de   :  { %v1296_v53 = vadd.f32 %v1295_v46, %v1255_v6  ;;  %v1373_v21 = vpop.f32.mrf.mxu3  ;;  %v1506_v6 = vsub.f32 %v1504_v41, %v1505_v27  ;;  %1502 = vmatpush.msra.mxu1 %v1501_v7 }
 0x3df   :  { %1596 = vmatpush.msrb.mxu0 %v1499_v40 }
 0x3e0   :  { %v1339_v52 = vadd.f32 %v1338_v45, %v1296_v53  ;;  %v1511_v45 = vand.u32 4294901760, %v1510_v34  ;;  %v1507_v46 = vand.u32 4294901760, %v1506_v6  ;;  %v3568_v53 = vld [vmem:[%s4009_s11 + $0x18] sm:$0xff] }
 0x3e1   :  { %1600 = vmatpush.msrb.mxu0 %v1505_v27  ;;  %v3571_v51 = vand.u32 4294901760, %v3568_v53 }
 0x3e2   :  { %v3516_v57 = vadd.f32 %v1373_v21, %v1339_v52  ;;  %v1512_v48 = vsub.f32 %v1510_v34, %v1511_v45  ;;  %1508 = vmatpush.msra.mxu1 %v1507_v46  ;;  %v3576_v52 = vld [vmem:[%s4009_s11 + $0x10] sm:$0xff] }
 0x3e3   :  { %1604 = vmatpush.msrb.mxu0 %v1511_v45  ;;  %v3579_v47 = vand.u32 4294901760, %v3576_v52  ;;  %1660 = vmatpush.msrb.mxu2 %v3571_v51 }
 0x3e4   :  { %1394 = vmax.xlane.f32.xlu1 %v3516_v57  ;;  %v1342_v49 = vpop.f32.mrf.mxu2  ;;  %v1264_v3 = vpop.f32.mrf.mxu0  ;;  %v1513_v50 = vand.u32 4294901760, %v1512_v48 }
 0x3e5   :  { %v1301_v61 = vpop.f32.mrf.mxu1  ;;  %v1265_v16 = vadd.f32 %v1264_v3, %v1224_v14  ;;  %1662 = vmatpush.msrb.mxu2 %v3579_v47 }
 0x3e6   :  { %v1302_v5 = vadd.f32 %v1301_v61, %v1260_v60  ;;  %v1377_v56 = vpop.f32.mrf.mxu3  ;;  %1514 = vmatpush.msra.mxu1 %v1513_v50  ;;  %v3588_v60 = vand.u32 4294901760, %v3585_v55 }
 0x3e8   :  { %v1343_v9 = vadd.f32 %v1342_v49, %v1302_v5  ;;  %1623 = vmatpush.msrb.mxu1 %v1462_v32  ;;  %v3594_v49 = vld [vmem:[%s4009_s11] sm:$0xff]  ;;  %1664 = vmatpush.msrb.mxu2 %v3588_v60 }
 0x3e9   :  { %v3597_v62 = vand.u32 4294901760, %v3594_v49 }
 0x3ea   :  { %v3522_v54 = vadd.f32 %v1377_v56, %v1343_v9  ;;  %1625 = vmatpush.msrb.mxu1 %v1464_v26  ;;  %v1425_v56 = vand.u32 127, %v1424_v10 }
 0x3eb   :  { %1666 = vmatpush.msrb.mxu2 %v3597_v62 }
 0x3ec   :  { %1390 = vmax.xlane.f32.xlu1 %v3520_v13  ;;  %1396 = vmax.xlane.f32.xlu2 %v3522_v54  ;;  %v1346_v20 = vpop.f32.mrf.mxu2  ;;  %v1427_v2 = vadd.s32 4294967288, %v1425_v56  ;;  %v1431_v14 = vadd.s32 4294967280, %v1425_v56 }
 0x3ed   :  { %v1307_v17 = vpop.f32.mrf.mxu1  ;;  %1627 = vmatpush.msrb.mxu1 %v1466_v38 }
 0x3ee   :  { %v1308_v22 = vadd.f32 %v1307_v17, %v1265_v16  ;;  %v1381_v58 = vpop.f32.mrf.mxu3  ;;  %v1435_v16 = vadd.s32 4294967272, %v1425_v56 }
 0x3ef   :  { %1629 = vmatpush.msrb.mxu1 %v1468_v42 }
 0x3f0   :  { %v1347_v23 = vadd.f32 %v1346_v20, %v1308_v22 }
 0x3f2   :  { %v3526_v12 = vadd.f32 %v1381_v58, %v1347_v23 }
 0x3f4   :  { %1398 = vmax.xlane.f32.xlu0 %v3526_v12 }
 0x404   :  { %1846 = vperm.xlu2 %2932, %v1840_v25  }
 0x405   :  { %1851 = vperm.xlu1 %2931, %v1841_v24  }
 0x408   :  { %1856 = vperm.xlu0 %2933, %v1842_v11  }
 0x40c   :  { %1861 = vperm.xlu2 %2932, %v1843_v1  }
 0x40d   :  { %2935 = vset.pattern.permute.xlu1 %v3545_v30 }
 0x410   :  { %2934 = vset.pattern.permute.xlu0 %v3539_v29 }
 0x414   :  { %2936 = vset.pattern.permute.xlu2 %v3549_v4 }
 0x42b   :  { %v1385_v21 = vpop.xlane.xlu1 %1384 }
 0x42c   :  { %v1426_v25 = vperm.slane %v1385_v21, %v1425_v56 }
 0x433   :  { %v1387_v61 = vpop.xlane.xlu0 %1386 }
 0x434   :  { %v1428_v22 = vperm.slane %v1387_v61, %v1427_v2  ;;  %v1401_v11 = vsub.f32 %v3506_v28, %v1387_v61 }
 0x436   :  { %v1430_v59 = vsel %vm1429_vm4, %v1428_v22, %v1426_v25  ;;  %v3626_v37 = vand.u32 4294901760, %v1401_v11 }
 0x438   :  { %v3638_v0 = vsub.f32 %v1401_v11, %v3626_v37 }
 0x43a   :  { %v1955_v48 = vand.u32 4294901760, %v3638_v0 }
 0x43b   :  { %v1389_v9 = vpop.xlane.xlu0 %1388 }
 0x43c   :  { %v1402_v58 = vsub.f32 %v3509_v31, %v1389_v9  ;;  %v1432_v24 = vperm.slane %v1389_v9, %v1431_v14 }
 0x43e   :  { %v3620_v35 = vand.u32 4294901760, %v1402_v58  ;;  %v1434_v28 = vsel %vm1433_vm5, %v1432_v24, %v1430_v59 }
 0x440   :  { %v3634_v41 = vsub.f32 %v1402_v58, %v3620_v35 }
 0x442   :  { %v1949_v6 = vand.u32 4294901760, %v3634_v41 }
 0x444   :  { %v1950_v61 = vsub.f32 %v3634_v41, %v1949_v6 }
 0x44f   :  { %v3603_v5 = vpop.xlane.xlu2 %1392 }
 0x450   :  { %v1439_v1 = vperm.slane %v3603_v5, %v1425_v56 }
 0x457   :  { %v3600_v63 = vpop.xlane.xlu1 %1394 }
 0x458   :  { %v1440_v23 = vperm.slane %v3600_v63, %v1427_v2 }
 0x45a   :  { %v1441_v26 = vsel %vm1429_vm4, %v1440_v23, %v1439_v1 }
 0x45f   :  { %v1391_v3 = vpop.xlane.xlu1 %1390  ;;  %v3607_v20 = vpop.xlane.xlu2 %1396 }
 0x460   :  { %v1403_v17 = vsub.f32 %v3520_v13, %v1391_v3  ;;  %v1442_v10 = vperm.slane %v3607_v20, %v1431_v14  ;;  %v1436_v8 = vperm.slane %v1391_v3, %v1435_v16  ;;  %v1400_v13 = vsub.f32 %v3503_v15, %v1385_v21 }
 0x461   :  { %v1689_v21 = vsub.f32 %v3568_v53, %v3571_v51  ;;  %v1695_v3 = vsub.f32 %v3576_v52, %v3579_v47  ;;  %v1956_v14 = vsub.f32 %v3638_v0, %v1955_v48  ;;  %v1951_v53 = vand.u32 4294901760, %v1950_v61 }
 0x462   :  { %v3614_v32 = vand.u32 4294901760, %v1403_v17  ;;  %v1443_v36 = vsel %vm1433_vm5, %v1442_v10, %v1441_v26  ;;  %v1438_v38 = vsel %vm1437_vm6, %v1436_v8, %v1434_v28  ;;  %v3631_v40 = vand.u32 4294901760, %v1400_v13 }
 0x463   :  { %v1957_v22 = vand.u32 4294901760, %v1956_v14  ;;  %v1707_v52 = vsub.f32 %v3594_v49, %v3597_v62  ;;  %v1696_v25 = vand.u32 4294901760, %v1695_v3  ;;  %v1405_v61 = vsub.f32 %v3516_v57, %v3600_v63 }
 0x464   :  { %v3629_v15 = vsub.f32 %v1403_v17, %v3614_v32  ;;  %v3642_v7 = vsub.f32 %v1400_v13, %v3631_v40 }
 0x465   :  { %v1697_v49 = vsub.f32 %v1695_v3, %v1696_v25  ;;  %v1708_v8 = vand.u32 4294901760, %v1707_v52 }
 0x466   :  { %v1943_v27 = vand.u32 4294901760, %v3629_v15  ;;  %v1961_v56 = vand.u32 4294901760, %v3642_v7 }
 0x467   :  { %v3618_v31 = vpop.xlane.xlu0 %1398  ;;  %v1698_v11 = vand.u32 4294901760, %v1697_v49  ;;  %v1709_v59 = vsub.f32 %v1707_v52, %v1708_v8 }
 0x468   :  { %v1444_v33 = vperm.slane %v3618_v31, %v1435_v16  ;;  %v1944_v46 = vsub.f32 %v3629_v15, %v1943_v27  ;;  %v1701_v16 = vsub.f32 %v3585_v55, %v3588_v60  ;;  %v1962_v17 = vsub.f32 %v3642_v7, %v1961_v56 }
 0x469   :  { %v1690_v55 = vand.u32 4294901760, %v1689_v21  ;;  %v1710_v26 = vand.u32 4294901760, %v1709_v59 }
 0x46a   :  { %v1445_v18 = vsel %vm1437_vm6, %v1444_v33, %v1443_v36  ;;  %v1945_v9 = vand.u32 4294901760, %v1944_v46  ;;  %v1963_v58 = vand.u32 4294901760, %v1962_v17  ;;  %v1702_v10 = vand.u32 4294901760, %v1701_v16  ;;  %v2945_v33 = vld [vmem:[%s4008_s10] ss:$0 sm:$0xff] }
 0x46b   :  { %v1447_v39 = vsel %vm1446_vm7, %v1445_v18, %v1438_v38  ;;  %v1691_v23 = vsub.f32 %v1689_v21, %v1690_v55 }
 0x46c   :  { %v1448_v42 = vsel %vm282_vm12, %v1447_v39, 0  ;;  %v1703_v1 = vsub.f32 %v1701_v16, %v1702_v10  ;;  %v1832_v39 = vld [vmem:[%s4011_s13] sm:$0xff] }
 0x46d   :  { %v1470_v43 = vand.u32 4294901760, %v1448_v42  ;;  %v1692_v24 = vand.u32 4294901760, %v1691_v23 }
 0x46e   :  { %v1704_v13 = vand.u32 4294901760, %v1703_v1 }
 0x46f   :  { %1516 = vmatmul.f32.vlgmr.msra.gmra.mxu1 %v1470_v43  ;;  %v1471_v34 = vsub.f32 %v1448_v42, %v1470_v43  ;;  %1693 = vmatpush.msrb.mxu3 %v1692_v24 }
 0x470   :  { %1760 = vmatpush.msra.mxu1 %v3571_v51 }
 0x471   :  { %1546 = vmatmul.f32.vlgmr.msra.gmra.mxu2 %v1471_v34  ;;  %v1472_v45 = vand.u32 4294901760, %v1471_v34  ;;  %1699 = vmatpush.msrb.mxu3 %v1698_v11 }
 0x472   :  { %1762 = vmatpush.msra.mxu1 %v3579_v47  ;;  %1789 = vmatpush.msra.mxu2 %v1690_v55 }
 0x473   :  { %1573 = vmatmul.f32.vlgmr.msra.gmra.mxu3 %v1472_v45  ;;  %v1473_v50 = vsub.f32 %v1471_v34, %v1472_v45  ;;  %v1406_v45 = vsub.f32 %v3522_v54, %v3607_v20  ;;  %v1833_v54 = vld [vmem:[%s4011_s13 + $0x8] sm:$0xff]  ;;  %v3706_v20 = vand.u32 4294901760, %v1405_v61 }
 0x474   :  { %1764 = vmatpush.msra.mxu1 %v3588_v60  ;;  %1793 = vmatpush.msra.mxu2 %v1696_v25 }
 0x475   :  { %v1474_v2 = vand.u32 4294901760, %v1473_v50  ;;  %1705 = vmatpush.msrb.mxu3 %v1704_v13  ;;  %v3698_v14 = vand.u32 4294901760, %v1406_v45 }
 0x476   :  { %1766 = vmatpush.msra.mxu1 %v3597_v62  ;;  %1797 = vmatpush.msra.mxu2 %v1702_v10  ;;  %v1834_v10 = vld [vmem:[%s4011_s13 + $0x10] sm:$0xff] }
 0x477   :  { %1475 = vmatmul.f32.vlgmr.msra.gmra.mxu0 %v1474_v2  ;;  %1631 = vmatmul.f32.vlgmr.msrb.gmra.mxu1 %v1470_v43  ;;  %v1871_v59 = vsel %vm282_vm12, %v1834_v10, 0 }
 0x478   :  { %1946 = vmatpush.msrb.mxu1 %v1945_v9  ;;  %1731 = vmatpush.msra.mxu0 %v1689_v21 }
 0x479   :  { %1801 = vmatpush.msra.mxu2 %v1708_v8  ;;  %1711 = vmatpush.msrb.mxu3 %v1710_v26 }
 0x47a   :  { %1952 = vmatpush.msrb.mxu1 %v1951_v53  ;;  %1734 = vmatpush.msra.mxu0 %v1695_v3  ;;  %v1404_v3 = vsub.f32 %v3512_v44, %v3603_v5  ;;  %v1868_v44 = vsel %vm282_vm12, %v1833_v54, 0 }
 0x47b   :  { %1820 = vmatpush.msra.mxu3 %v3571_v51  ;;  %v3728_v55 = vand.u32 4294901760, %v1868_v44 }
 0x47c   :  { %1958 = vmatpush.msrb.mxu1 %v1957_v22  ;;  %1737 = vmatpush.msra.mxu0 %v1701_v16  ;;  %v3715_v5 = vand.u32 4294901760, %v1404_v3  ;;  %v3718_v16 = vsub.f32 %v1406_v45, %v3698_v14 }
 0x47d   :  { %1822 = vmatpush.msra.mxu3 %v3579_v47  ;;  %v1865_v47 = vsel %vm282_vm12, %v1832_v39, 0  ;;  %v3751_v8 = vsub.f32 %v1868_v44, %v3728_v55 }
 0x47e   :  { %1964 = vmatpush.msrb.mxu1 %v1963_v58  ;;  %1740 = vmatpush.msra.mxu0 %v1707_v52  ;;  %v3690_v50 = vand.u32 4294901760, %v1865_v47  ;;  %v3724_v52 = vsub.f32 %v1405_v61, %v3706_v20  ;;  %v3731_v25 = vsub.f32 %v1404_v3, %v3715_v5  ;;  %v2239_v49 = vand.u32 4294901760, %v3718_v16 }
 0x47f   :  { %1606 = vmatmul.f32.vlgmr.msrb.gmra.mxu0 %v1470_v43  ;;  %1824 = vmatpush.msra.mxu3 %v3588_v60  ;;  %v1407_v60 = vsub.f32 %v3526_v12, %v3618_v31 }
 0x480   :  { %1889 = vmatpush.msrb.mxu0 %v3614_v32  ;;  %v3701_v31 = vsub.f32 %v1865_v47, %v3690_v50  ;;  %v2245_v1 = vand.u32 4294901760, %v3724_v52  ;;  %v2240_v26 = vsub.f32 %v3718_v16, %v2239_v49 }
 0x481   :  { %1826 = vmatpush.msra.mxu3 %v3597_v62  ;;  %v3694_v2 = vand.u32 4294901760, %v1407_v60 }
 0x482   :  { %1891 = vmatpush.msrb.mxu0 %v3620_v35  ;;  %v1898_v17 = vand.u32 4294901760, %v3701_v31 }
 0x483   :  { %v3709_v57 = vsub.f32 %v1407_v60, %v3694_v2 }
 0x484   :  { %1893 = vmatpush.msrb.mxu0 %v3626_v37  ;;  %v1899_v24 = vsub.f32 %v3701_v31, %v1898_v17 }
 0x485   :  { %v2233_v58 = vand.u32 4294901760, %v3709_v57 }
 0x486   :  { %1895 = vmatpush.msrb.mxu0 %v3631_v40 }
 0x4ec   :  { %v1517_v28 = vpop.f32.mrf.mxu1 }
 0x4f4   :  { %v1476_v36 = vpop.f32.mrf.mxu0  ;;  %v1547_v42 = vpop.f32.mrf.mxu2 }
 0x4f5   :  { %v1477_v38 = vadd.f32 %v2945_v33, %v1476_v36  ;;  %v1632_v21 = vpop.f32.mrf.mxu1  ;;  %v2251_v33 = vand.u32 4294901760, %v3731_v25  ;;  %v3769_v36 = vand.u32 4294901760, %v1871_v59 }
 0x4f6   :  { %v1574_v43 = vpop.f32.mrf.mxu3 }
 0x4f7   :  { %v1518_v18 = vadd.f32 %v1517_v28, %v1477_v38  ;;  %v2246_v28 = vsub.f32 %v3724_v52, %v2245_v1  ;;  %v1835_v38 = vld [vmem:[%s4011_s13 + $0x18] sm:$0xff] }
 0x4f8   :  { %v1874_v39 = vsel %vm282_vm12, %v1835_v38, 0 }
 0x4f9   :  { %v1548_v51 = vadd.f32 %v1547_v42, %v1518_v18  ;;  %v1913_v18 = vsub.f32 %v1871_v59, %v3769_v36 }
 0x4fb   :  { %v1575_v62 = vadd.f32 %v1574_v43, %v1548_v51  ;;  %v1914_v42 = vand.u32 4294901760, %v1913_v18  ;;  %v3792_v51 = vand.u32 4294901760, %v1874_v39 }
 0x4fc   :  { %v1607_v34 = vpop.f32.mrf.mxu0 }
 0x4fd   :  { %v1608_v46 = vadd.f32 %v1607_v34, %v1575_v62  ;;  %v1836_v34 = vld [vmem:[%s4011_s13 + $0x20] sm:$0xff] }
 0x4fe   :  { %v2155_v45 = vsel %vm282_vm12, %v1836_v34, 0 }
 0x4ff   :  { %v1633_v9 = vadd.f32 %v1632_v21, %v1608_v46  ;;  %v2186_v46 = vand.u32 4294901760, %v2155_v45  ;;  %v1837_v21 = vld [vmem:[%s4011_s13 + $0x28] sm:$0xff] }
 0x501   :  { %v1635_v12 = vmax.f32 %v1633_v9, 0.0  ;;  %v2187_v61 = vsub.f32 %v2155_v45, %v2186_v46 }
 0x503   :  { %v1645_v63 = vsel %vm282_vm12, %v1635_v12, 0  ;;  %v2188_v9 = vand.u32 4294901760, %v2187_v61 }
 0x504   :  { %v3712_v53 = vand.u32 4294901760, %v1645_v63 }
 0x505   :  { %v2189_v12 = vsub.f32 %v2187_v61, %v2188_v9 }
 0x506   :  { %v1668_v22 = vsub.f32 %v1645_v63, %v3712_v53  ;;  %1713 = vmatmul.f32.vlgmr.msrb.gmra.mxu3 %v3712_v53 }
 0x507   :  { %2040 = vmatpush.msrb.mxu3 %v3614_v32 }
 0x508   :  { %1743 = vmatmul.f32.vlgmr.msra.gmra.mxu0 %v1668_v22  ;;  %v1669_v23 = vand.u32 4294901760, %v1668_v22 }
 0x509   :  { %2042 = vmatpush.msrb.mxu3 %v3620_v35  ;;  %2087 = vmatpush.msra.mxu0 %v1943_v27  ;;  %v2234_v27 = vsub.f32 %v3709_v57, %v2233_v58 }
 0x50a   :  { %1770 = vmatmul.f32.vlgmr.msra.gmra.mxu1 %v1669_v23  ;;  %v1670_v11 = vsub.f32 %v1668_v22, %v1669_v23 }
 0x50b   :  { %2044 = vmatpush.msrb.mxu3 %v3626_v37  ;;  %2091 = vmatpush.msra.mxu0 %v1949_v6  ;;  %v1900_v6 = vand.u32 4294901760, %v1899_v24 }
 0x50c   :  { %2130 = vmatpush.msra.mxu1 %v3614_v32  ;;  %v1671_v13 = vand.u32 4294901760, %v1670_v11  ;;  %v2235_v32 = vand.u32 4294901760, %v2234_v27 }
 0x50d   :  { %2046 = vmatpush.msrb.mxu3 %v3631_v40  ;;  %2095 = vmatpush.msra.mxu0 %v1955_v48  ;;  %v1906_v48 = vand.u32 4294901760, %v3751_v8 }
 0x50e   :  { %2132 = vmatpush.msra.mxu1 %v3620_v35  ;;  %1672 = vmatmul.f32.vlgmr.msrb.gmra.mxu2 %v1671_v13  ;;  %v2241_v35 = vand.u32 4294901760, %v2240_v26 }
 0x50f   :  { %1828 = vmatmul.f32.vlgmr.msra.gmra.mxu3 %v3712_v53  ;;  %1996 = vmatpush.msrb.mxu2 %v3629_v15  ;;  %v2252_v15 = vsub.f32 %v3731_v25, %v2251_v33 }
 0x510   :  { %2099 = vmatpush.msra.mxu0 %v1961_v56  ;;  %2134 = vmatpush.msra.mxu1 %v3626_v37  ;;  %v2247_v56 = vand.u32 4294901760, %v2246_v28  ;;  %v1907_v37 = vsub.f32 %v3751_v8, %v1906_v48 }
 0x511   :  { %2236 = vmatpush.msra.mxu3 %v2235_v32  ;;  %1901 = vmatmul.f32.vlgmr.msrb.gmra.mxu0 %v1900_v6  ;;  %v2445_v6 = vld [vmem:[%s4013_s15 + $0x8] sm:$0xff]  ;;  %v2444_v32 = vld [vmem:[%s4013_s15] sm:$0xff] }
 0x512   :  { %1999 = vmatpush.msrb.mxu2 %v3634_v41  ;;  %2136 = vmatpush.msra.mxu1 %v3631_v40  ;;  %v2253_v41 = vand.u32 4294901760, %v2252_v15  ;;  %v1908_v40 = vand.u32 4294901760, %v1907_v37 }
 0x513   :  { %2242 = vmatpush.msra.mxu3 %v2241_v35  ;;  %2286 = vmatpush.msrb.mxu0 %v3709_v57 }
 0x514   :  { %1966 = vmatmul.f32.vlgmr.msrb.gmra.mxu1 %v3690_v50  ;;  %2002 = vmatpush.msrb.mxu2 %v3638_v0  ;;  %v1915_v0 = vsub.f32 %v1913_v18, %v1914_v42 }
 0x515   :  { %2248 = vmatpush.msra.mxu3 %v2247_v56  ;;  %2289 = vmatpush.msrb.mxu0 %v3718_v16 }
 0x516   :  { %2330 = vmatpush.msrb.mxu1 %v3694_v2  ;;  %2005 = vmatpush.msrb.mxu2 %v3642_v7  ;;  %v1921_v7 = vsub.f32 %v1874_v39, %v3792_v51  ;;  %v1916_v43 = vand.u32 4294901760, %v1915_v0 }
 0x517   :  { %2254 = vmatpush.msra.mxu3 %v2253_v41  ;;  %2292 = vmatpush.msrb.mxu0 %v3724_v52 }
 0x518   :  { %2332 = vmatpush.msrb.mxu1 %v3698_v14  ;;  %1803 = vmatmul.f32.vlgmr.msra.gmra.mxu2 %v3712_v53  ;;  %v1922_v47 = vand.u32 4294901760, %v1921_v7 }
 0x519   :  { %2050 = vmatmul.f32.vlgmr.msrb.gmra.mxu3 %v1898_v17  ;;  %2179 = vmatpush.msra.mxu2 %v3694_v2 }
 0x51a   :  { %2295 = vmatpush.msrb.mxu0 %v3731_v25  ;;  %2334 = vmatpush.msrb.mxu1 %v3706_v20  ;;  %v1923_v60 = vsub.f32 %v1921_v7, %v1922_v47 }
 0x51b   :  { %2420 = vmatpush.msrb.mxu3 %v3694_v2  ;;  %1909 = vmatmul.f32.gmra.mxu0 %v1908_v40  ;;  %v2158_v2 = vsel %vm282_vm12, %v1837_v21, 0 }
 0x51c   :  { %2181 = vmatpush.msra.mxu2 %v3698_v14  ;;  %2336 = vmatpush.msrb.mxu1 %v3715_v5  ;;  %v1924_v62 = vand.u32 4294901760, %v1923_v60  ;;  %v2194_v3 = vand.u32 4294901760, %v2158_v2 }
 0x51d   :  { %2422 = vmatpush.msrb.mxu3 %v3698_v14  ;;  %1970 = vmatmul.f32.gmra.mxu1 %v3728_v55  ;;  %v1838_v14 = vld [vmem:[%s4011_s13 + $0x30] sm:$0xff] }
 0x51e   :  { %2183 = vmatpush.msra.mxu2 %v3706_v20  ;;  %v2161_v54 = vsel %vm282_vm12, %v1838_v14, 0 }
 0x51f   :  { %2424 = vmatpush.msrb.mxu3 %v3706_v20  ;;  %v2190_v20 = vand.u32 4294901760, %v2189_v12  ;;  %v2202_v63 = vand.u32 4294901760, %v2161_v54 }
 0x520   :  { %2185 = vmatpush.msra.mxu2 %v3715_v5 }
 0x521   :  { %2426 = vmatpush.msrb.mxu3 %v3715_v5  ;;  %2008 = vmatmul.f32.vlgmr.msrb.gmra.mxu2 %v3701_v31  ;;  %v2195_v31 = vsub.f32 %v2158_v2, %v2194_v3  ;;  %v2203_v44 = vsub.f32 %v2161_v54, %v2202_v63 }
 0x522   :  { %2377 = vmatpush.msrb.mxu2 %v2233_v58  ;;  %2056 = vmatmul.f32.gmra.mxu3 %v1906_v48 }
 0x523   :  { %1917 = vmatmul.f32.gmra.mxu0 %v1916_v43  ;;  %v2196_v57 = vand.u32 4294901760, %v2195_v31  ;;  %v2204_v17 = vand.u32 4294901760, %v2203_v44 }
 0x524   :  { %2381 = vmatpush.msrb.mxu2 %v2239_v49  ;;  %v2447_v49 = vld [vmem:[%s4013_s15 + $0x18] sm:$0xff] }
 0x525   :  { %1974 = vmatmul.f32.gmra.mxu1 %v3769_v36  ;;  %v2197_v53 = vsub.f32 %v2195_v31, %v2196_v57  ;;  %v2205_v52 = vsub.f32 %v2203_v44, %v2204_v17  ;;  %v2467_v10 = vand.u32 4294901760, %v2447_v49 }
 0x526   :  { %2385 = vmatpush.msrb.mxu2 %v2245_v1 }
 0x527   :  { %v2198_v16 = vand.u32 4294901760, %v2197_v53  ;;  %v2497_v11 = vsub.f32 %v2447_v49, %v2467_v10  ;;  %v3868_v53 = vpop.permute.xlu0 %1856 }
 0x528   :  { %2389 = vmatpush.msrb.mxu2 %v2251_v33  ;;  %v2471_v33 = vand.u32 4294901760, %v2445_v6 }
 0x529   :  { %2013 = vmatmul.f32.gmra.mxu2 %v3751_v8  ;;  %v2498_v27 = vand.u32 4294901760, %v2497_v11  ;;  %v2446_v8 = vld [vmem:[%s4013_s15 + $0x10] sm:$0xff]  ;;  %s3023_s15 = smov 128  }
 0x52a   :  { %2062 = vmatmul.f32.gmra.mxu3 %v1914_v42  ;;  %v2469_v13 = vand.u32 4294901760, %v2446_v8  ;;  %v2509_v48 = vsub.f32 %v2445_v6, %v2471_v33 }
 0x52b   :  { %1925 = vmatmul.f32.gmra.mxu0 %v1924_v62  ;;  %v2499_v1 = vsub.f32 %v2497_v11, %v2498_v27 }
 0x52c   :  { %v2503_v26 = vsub.f32 %v2446_v8, %v2469_v13  ;;  %v2510_v15 = vand.u32 4294901760, %v2509_v48 }
 0x52d   :  { %1978 = vmatmul.f32.gmra.mxu1 %v3792_v51  ;;  %v2500_v59 = vand.u32 4294901760, %v2499_v1 }
 0x52e   :  { %v2504_v28 = vand.u32 4294901760, %v2503_v26  ;;  %v2511_v37 = vsub.f32 %v2509_v48, %v2510_v15 }
 0x530   :  { %v2505_v35 = vsub.f32 %v2503_v26, %v2504_v28  ;;  %v2512_v39 = vand.u32 4294901760, %v2511_v37 }
 0x531   :  { %2018 = vmatmul.f32.gmra.mxu2 %v1913_v18 }
 0x532   :  { %2068 = vmatmul.f32.gmra.mxu3 %v1922_v47  ;;  %v2506_v56 = vand.u32 4294901760, %v2505_v35  ;;  %v2946_v47 = vld [vmem:[%s4010_s12] ss:$0 sm:$0xff] }
 0x533   :  { %2101 = vmatmul.f32.vlgmr.msra.gmra.mxu0 %v3690_v50 }
 0x534   :  { %2468 = vmatpush.msra.mxu0 %v2467_v10 }
 0x535   :  { %2138 = vmatmul.f32.vlgmr.msra.gmra.mxu1 %v3690_v50  ;;  %v1839_v50 = vld [vmem:[%s4011_s13 + $0x38] sm:$0xff] }
 0x536   :  { %v2164_v5 = vsel %vm282_vm12, %v1839_v50, 0  ;;  %2470 = vmatpush.msra.mxu0 %v2469_v13  ;;  %2501 = vmatpush.msra.mxu1 %v2500_v59 }
 0x537   :  { %v2210_v22 = vand.u32 4294901760, %v2164_v5 }
 0x538   :  { %2472 = vmatpush.msra.mxu0 %v2471_v33  ;;  %2507 = vmatpush.msra.mxu1 %v2506_v56 }
 0x539   :  { %2023 = vmatmul.f32.gmra.mxu2 %v1921_v7  ;;  %v2211_v58 = vsub.f32 %v2164_v5, %v2210_v22  ;;  %v3859_v7 = vpop.permute.xlu2 %1846 }
 0x53a   :  { %2256 = vmatmul.f32.vlgmr.msra.gmra.mxu3 %v2186_v46  ;;  %2513 = vmatpush.msra.mxu1 %v2512_v39 }
 0x53b   :  { %2105 = vmatmul.f32.gmra.mxu0 %v3728_v55  ;;  %v2212_v23 = vand.u32 4294901760, %v2211_v58  ;;  %2568 = vmatpush.msra.mxu3 %v2467_v10 }
 0x53d   :  { %2142 = vmatmul.f32.gmra.mxu1 %v3728_v55  ;;  %v2206_v55 = vand.u32 4294901760, %v2205_v52  ;;  %v2213_v25 = vsub.f32 %v2211_v58, %v2212_v23  ;;  %2570 = vmatpush.msra.mxu3 %v2469_v13 }
 0x53f   :  { %v2214_v24 = vand.u32 4294901760, %v2213_v25  ;;  %2572 = vmatpush.msra.mxu3 %v2471_v33 }
 0x541   :  { %2191 = vmatmul.f32.vlgmr.msra.gmra.mxu2 %v2190_v20 }
 0x542   :  { %2260 = vmatmul.f32.gmra.mxu3 %v2194_v3  ;;  %2539 = vmatpush.msra.mxu2 %v2497_v11  ;;  %v1862_v11 = vpop.permute.xlu2 %1861 }
 0x543   :  { %2109 = vmatmul.f32.gmra.mxu0 %v3769_v36 }
 0x544   :  { %2542 = vmatpush.msra.mxu2 %v2503_v26 }
 0x545   :  { %2146 = vmatmul.f32.gmra.mxu1 %v3769_v36  ;;  %v2473_v36 = vand.u32 4294901760, %v2444_v32 }
 0x546   :  { %2545 = vmatpush.msra.mxu2 %v2509_v48 }
 0x547   :  { %v2515_v38 = vsub.f32 %v2444_v32, %v2473_v36  ;;  %2474 = vmatpush.msra.mxu0 %v2473_v36  ;;  %2574 = vmatpush.msra.mxu3 %v2473_v36 }
 0x549   :  { %2199 = vmatmul.f32.gmra.mxu2 %v2198_v16  ;;  %v2516_v18 = vand.u32 4294901760, %v2515_v38 }
 0x54a   :  { %2264 = vmatmul.f32.gmra.mxu3 %v2202_v63  ;;  %2548 = vmatpush.msra.mxu2 %v2515_v38 }
 0x54b   :  { %2113 = vmatmul.f32.gmra.mxu0 %v3792_v51  ;;  %v2517_v41 = vsub.f32 %v2515_v38, %v2516_v18 }
 0x54d   :  { %2150 = vmatmul.f32.gmra.mxu1 %v3792_v51  ;;  %v2518_v40 = vand.u32 4294901760, %v2517_v41 }
 0x54f   :  { %2519 = vmatpush.msra.mxu1 %v2518_v40 }
 0x551   :  { %2207 = vmatmul.f32.gmra.mxu2 %v2206_v55 }
 0x552   :  { %2268 = vmatmul.f32.gmra.mxu3 %v2210_v22 }
 0x553   :  { %2298 = vmatmul.f32.vlgmr.msrb.gmra.mxu0 %v2187_v61 }
 0x554   :  { %2597 = vmatpush.msrb.mxu0 %v2498_v27 }
 0x555   :  { %2340 = vmatmul.f32.vlgmr.msrb.gmra.mxu1 %v2188_v9  ;;  %v3865_v9 = vpop.permute.xlu1 %1851 }
 0x556   :  { %2601 = vmatpush.msrb.mxu0 %v2504_v28  ;;  %2628 = vmatpush.msrb.mxu1 %v2467_v10 }
 0x558   :  { %2605 = vmatpush.msrb.mxu0 %v2510_v15  ;;  %2630 = vmatpush.msrb.mxu1 %v2469_v13 }
 0x559   :  { %2215 = vmatmul.f32.gmra.mxu2 %v2214_v24 }
 0x55a   :  { %2428 = vmatmul.f32.vlgmr.msrb.gmra.mxu3 %v2186_v46  ;;  %2609 = vmatpush.msrb.mxu0 %v2516_v18 }
 0x55b   :  { %2303 = vmatmul.f32.gmra.mxu0 %v2195_v31  ;;  %2632 = vmatpush.msrb.mxu1 %v2471_v33 }
 0x55d   :  { %2346 = vmatmul.f32.gmra.mxu1 %v2196_v57 }
 0x55e   :  { %2634 = vmatpush.msrb.mxu1 %v2473_v36 }
 0x561   :  { %2391 = vmatmul.f32.vlgmr.msrb.gmra.mxu2 %v2186_v46 }
 0x562   :  { %2432 = vmatmul.f32.gmra.mxu3 %v2194_v3 }
 0x563   :  { %2308 = vmatmul.f32.gmra.mxu0 %v2203_v44 }
 0x565   :  { %2352 = vmatmul.f32.gmra.mxu1 %v2204_v17 }
 0x569   :  { %2395 = vmatmul.f32.gmra.mxu2 %v2194_v3 }
 0x56a   :  { %2436 = vmatmul.f32.gmra.mxu3 %v2202_v63 }
 0x56b   :  { %2313 = vmatmul.f32.gmra.mxu0 %v2211_v58 }
 0x56d   :  { %2358 = vmatmul.f32.gmra.mxu1 %v2212_v23 }
 0x571   :  { %2399 = vmatmul.f32.gmra.mxu2 %v2202_v63 }
 0x572   :  { %2440 = vmatmul.f32.gmra.mxu3 %v2210_v22 }
 0x579   :  { %2403 = vmatmul.f32.gmra.mxu2 %v2210_v22 }
 0x585   :  { %v1744_v42 = vpop.f32.mrf.mxu0 }
 0x587   :  { %v1771_v51 = vpop.f32.mrf.mxu1 }
 0x589   :  { %v1714_v0 = vpop.f32.mrf.mxu3 }
 0x58e   :  { %v1902_v43 = vpop.f32.mrf.mxu0 }
 0x58f   :  { %v1903_v60 = vadd.f32 %v1902_v43, %v3859_v7 }
 0x591   :  { %v1967_v62 = vpop.f32.mrf.mxu1  ;;  %v1673_v34 = vpop.f32.mrf.mxu2 }
 0x592   :  { %v1968_v45 = vadd.f32 %v1967_v62, %v1903_v60  ;;  %v1674_v46 = vadd.f32 %v2946_v47, %v1673_v34  ;;  %v1829_v61 = vpop.f32.mrf.mxu3 }
 0x594   :  { %v1715_v21 = vadd.f32 %v1714_v0, %v1674_v46 }
 0x596   :  { %v1745_v2 = vadd.f32 %v1744_v42, %v1715_v21 }
 0x598   :  { %v1910_v3 = vpop.f32.mrf.mxu0  ;;  %v1772_v14 = vadd.f32 %v1771_v51, %v1745_v2 }
 0x599   :  { %v1911_v12 = vadd.f32 %v1910_v3, %v3865_v9 }
 0x59a   :  { %v1971_v31 = vpop.f32.mrf.mxu1 }
 0x59b   :  { %v1972_v54 = vadd.f32 %v1971_v31, %v1911_v12  ;;  %v1804_v20 = vpop.f32.mrf.mxu2 }
 0x59c   :  { %v1805_v57 = vadd.f32 %v1804_v20, %v1772_v14  ;;  %v2051_v63 = vpop.f32.mrf.mxu3 }
 0x59e   :  { %v1830_v50 = vadd.f32 %v1829_v61, %v1805_v57 }
 0x5a0   :  { %v2453_v44 = vsel %vm282_vm12, %v1830_v50, 0  ;;  %v1918_v5 = vpop.f32.mrf.mxu0  ;;  %2891 = vst.msk [vmem:[#allocation4] sm:$0x3] %vm2890_vm8, %v1830_v50 }
 0x5a1   :  { %v2475_v16 = vand.u32 4294901760, %v2453_v44  ;;  %v1919_v17 = vadd.f32 %v1918_v5, %v3868_v53  ;;  %2915 = dma.vmem_to_hbm [thread:$0]  %s2911_s26, 32, %s2913_s1, [#allocation5]  }
 0x5a2   :  { %v1975_v22 = vpop.f32.mrf.mxu1 }
 0x5a3   :  { %v2476_v52 = vsub.f32 %v2453_v44, %v2475_v16  ;;  %v1976_v58 = vadd.f32 %v1975_v22, %v1919_v17  ;;  %2521 = vmatmul.f32.vlgmr.msra.gmra.mxu1 %v2475_v16 }
 0x5a4   :  { %v2009_v55 = vpop.f32.mrf.mxu2 }
 0x5a5   :  { %v2477_v23 = vand.u32 4294901760, %v2476_v52  ;;  %v2010_v25 = vadd.f32 %v2009_v55, %v1968_v45  ;;  %2551 = vmatmul.f32.vlgmr.msra.gmra.mxu2 %v2476_v52  ;;  %v2057_v24 = vpop.f32.mrf.mxu3 }
 0x5a7   :  { %v2478_v49 = vsub.f32 %v2476_v52, %v2477_v23  ;;  %v2052_v10 = vadd.f32 %v2051_v63, %v2010_v25  ;;  %2578 = vmatmul.f32.vlgmr.msra.gmra.mxu3 %v2477_v23 }
 0x5a8   :  { %v1926_v27 = vpop.f32.mrf.mxu0 }
 0x5a9   :  { %v2479_v1 = vand.u32 4294901760, %v2478_v49  ;;  %v1927_v8 = vadd.f32 %v1926_v27, %v1862_v11 }
 0x5aa   :  { %v1979_v13 = vpop.f32.mrf.mxu1 }
 0x5ab   :  { %v1980_v59 = vadd.f32 %v1979_v13, %v1927_v8  ;;  %2480 = vmatmul.f32.vlgmr.msra.gmra.mxu0 %v2479_v1  ;;  %2636 = vmatmul.f32.vlgmr.msrb.gmra.mxu1 %v2475_v16 }
 0x5ac   :  { %v2014_v6 = vpop.f32.mrf.mxu2 }
 0x5ad   :  { %v2015_v26 = vadd.f32 %v2014_v6, %v1972_v54  ;;  %v2063_v33 = vpop.f32.mrf.mxu3 }
 0x5af   :  { %v2058_v32 = vadd.f32 %v2057_v24, %v2015_v26 }
 0x5b0   :  { %v2102_v28 = vpop.f32.mrf.mxu0 }
 0x5b1   :  { %v2103_v48 = vadd.f32 %v2102_v28, %v2052_v10 }
 0x5b2   :  { %v2139_v36 = vpop.f32.mrf.mxu1 }
 0x5b3   :  { %v3872_v35 = vadd.f32 %v2139_v36, %v2103_v48  ;;  %2611 = vmatmul.f32.vlgmr.msrb.gmra.mxu0 %v2475_v16 }
 0x5b4   :  { %v2019_v15 = vpop.f32.mrf.mxu2 }
 0x5b5   :  { %v2020_v38 = vadd.f32 %v2019_v15, %v1976_v58  ;;  %v2069_v56 = vpop.f32.mrf.mxu3 }
 0x5b7   :  { %v2064_v37 = vadd.f32 %v2063_v33, %v2020_v38 }
 0x5b8   :  { %v2106_v18 = vpop.f32.mrf.mxu0 }
 0x5b9   :  { %v2107_v39 = vadd.f32 %v2106_v18, %v2058_v32 }
 0x5ba   :  { %v2143_v41 = vpop.f32.mrf.mxu1 }
 0x5bb   :  { %v3874_v40 = vadd.f32 %v2143_v41, %v2107_v39 }
 0x5bc   :  { %v2024_v42 = vpop.f32.mrf.mxu2 }
 0x5bd   :  { %v2025_v51 = vadd.f32 %v2024_v42, %v1980_v59  ;;  %v2257_v0 = vpop.f32.mrf.mxu3 }
 0x5bf   :  { %v2070_v43 = vadd.f32 %v2069_v56, %v2025_v51  ;;  %v2947_v51 = vld [vmem:[%s4014_s16] ss:$0 sm:$0xff] }
 0x5c0   :  { %v2110_v47 = vpop.f32.mrf.mxu0 }
 0x5c1   :  { %v2111_v60 = vadd.f32 %v2110_v47, %v2064_v37 }
 0x5c2   :  { %v2147_v62 = vpop.f32.mrf.mxu1 }
 0x5c3   :  { %v3876_v34 = vadd.f32 %v2147_v62, %v2111_v60 }
 0x5c4   :  { %v2192_v45 = vpop.f32.mrf.mxu2 }
 0x5c5   :  { %v2193_v46 = vadd.f32 %v2192_v45, %v3859_v7  ;;  %v2261_v21 = vpop.f32.mrf.mxu3 }
 0x5c7   :  { %v2258_v61 = vadd.f32 %v2257_v0, %v2193_v46 }
 0x5c8   :  { %v2114_v2 = vpop.f32.mrf.mxu0 }
 0x5c9   :  { %v2115_v3 = vadd.f32 %v2114_v2, %v2070_v43 }
 0x5ca   :  { %v2151_v14 = vpop.f32.mrf.mxu1 }
 0x5cb   :  { %v3879_v12 = vadd.f32 %v2151_v14, %v2115_v3 }
 0x5cc   :  { %v2200_v31 = vpop.f32.mrf.mxu2 }
 0x5cd   :  { %v2201_v54 = vadd.f32 %v2200_v31, %v3865_v9  ;;  %v2265_v20 = vpop.f32.mrf.mxu3 }
 0x5cf   :  { %v2262_v57 = vadd.f32 %v2261_v21, %v2201_v54  ;;  %v2661_v54 = vadd.s32 24, %v3539_v29 }
 0x5d0   :  { %v2299_v63 = vpop.f32.mrf.mxu0 }
 0x5d1   :  { %v2300_v50 = vadd.f32 %v2299_v63, %v2258_v61 }
 0x5d2   :  { %v2341_v44 = vpop.f32.mrf.mxu1 }
 0x5d3   :  { %v2342_v5 = vadd.f32 %v2341_v44, %v2300_v50 }
 0x5d4   :  { %v2208_v16 = vpop.f32.mrf.mxu2 }
 0x5d5   :  { %v2209_v17 = vadd.f32 %v2208_v16, %v3868_v53  ;;  %v2269_v7 = vpop.f32.mrf.mxu3 }
 0x5d7   :  { %v2266_v22 = vadd.f32 %v2265_v20, %v2209_v17 }
 0x5d8   :  { %v2304_v52 = vpop.f32.mrf.mxu0 }
 0x5d9   :  { %v2305_v58 = vadd.f32 %v2304_v52, %v2262_v57 }
 0x5da   :  { %v2347_v55 = vpop.f32.mrf.mxu1 }
 0x5db   :  { %v2348_v23 = vadd.f32 %v2347_v55, %v2305_v58 }
 0x5dc   :  { %v2216_v25 = vpop.f32.mrf.mxu2 }
 0x5dd   :  { %v2217_v24 = vadd.f32 %v2216_v25, %v1862_v11  ;;  %v2429_v49 = vpop.f32.mrf.mxu3 }
 0x5df   :  { %v2270_v10 = vadd.f32 %v2269_v7, %v2217_v24 }
 0x5e0   :  { %v2309_v9 = vpop.f32.mrf.mxu0 }
 0x5e1   :  { %v2310_v27 = vadd.f32 %v2309_v9, %v2266_v22 }
 0x5e2   :  { %v2353_v1 = vpop.f32.mrf.mxu1 }
 0x5e3   :  { %v2354_v8 = vadd.f32 %v2353_v1, %v2310_v27 }
 0x5e4   :  { %v2392_v13 = vpop.f32.mrf.mxu2 }
 0x5e5   :  { %v2393_v59 = vadd.f32 %v2392_v13, %v2342_v5  ;;  %v2433_v33 = vpop.f32.mrf.mxu3 }
 0x5e7   :  { %v2430_v6 = vadd.f32 %v2429_v49, %v2393_v59 }
 0x5e8   :  { %v2314_v26 = vpop.f32.mrf.mxu0 }
 0x5e9   :  { %v2315_v53 = vadd.f32 %v2314_v26, %v2270_v10 }
 0x5ea   :  { %v2359_v32 = vpop.f32.mrf.mxu1 }
 0x5eb   :  { %v2360_v28 = vadd.f32 %v2359_v32, %v2315_v53 }
 0x5ec   :  { %v2396_v48 = vpop.f32.mrf.mxu2 }
 0x5ed   :  { %v2397_v36 = vadd.f32 %v2396_v48, %v2348_v23  ;;  %v2437_v38 = vpop.f32.mrf.mxu3 }
 0x5ef   :  { %v2434_v15 = vadd.f32 %v2433_v33, %v2397_v36 }
 0x5f4   :  { %v2400_v56 = vpop.f32.mrf.mxu2 }
 0x5f5   :  { %v2401_v11 = vadd.f32 %v2400_v56, %v2354_v8  ;;  %v2441_v39 = vpop.f32.mrf.mxu3 }
 0x5f7   :  { %v3883_v37 = vadd.f32 %v2437_v38, %v2401_v11 }
 0x5fc   :  { %v2404_v18 = vpop.f32.mrf.mxu2 }
 0x5fd   :  { %v2405_v41 = vadd.f32 %v2404_v18, %v2360_v28 }
 0x5ff   :  { %v2442_v42 = vadd.f32 %v2441_v39, %v2405_v41 }
 0x620   :  { %v2522_v0 = vpop.f32.mrf.mxu1 }
 0x628   :  { %v2481_v43 = vpop.f32.mrf.mxu0  ;;  %v2552_v62 = vpop.f32.mrf.mxu2 }
 0x629   :  { %v2482_v47 = vadd.f32 %v2947_v51, %v2481_v43  ;;  %v2637_v3 = vpop.f32.mrf.mxu1 }
 0x62a   :  { %v2579_v46 = vpop.f32.mrf.mxu3 }
 0x62b   :  { %v2523_v60 = vadd.f32 %v2522_v0, %v2482_v47 }
 0x62d   :  { %v2553_v45 = vadd.f32 %v2552_v62, %v2523_v60 }
 0x62f   :  { %v2580_v21 = vadd.f32 %v2579_v46, %v2553_v45 }
 0x630   :  { %v2612_v61 = vpop.f32.mrf.mxu0 }
 0x631   :  { %v2613_v2 = vadd.f32 %v2612_v61, %v2580_v21 }
 0x633   :  { %v2638_v14 = vadd.f32 %v2637_v3, %v2613_v2 }
 0x635   :  { %v2640_v31 = vperm.slane %v2638_v14, 0  ;;  %v2665_v20 = vperm.slane %v2638_v14, 1 }
 0x637   :  { %2657 = vperm.xlu2 %2936, %v2640_v31   ;;  %2651 = vperm.xlu1 %2935, %v2640_v31  }
 0x638   :  { %2645 = vperm.xlu0 %2934, %v2640_v31  }
 0x63f   :  { %2938 = vset.pattern.permute.xlu2 %v3539_v29  ;;  %2937 = vset.pattern.permute.xlu1 %v2661_v54 }
 0x640   :  { %2939 = vset.pattern.permute.xlu0 %v3545_v30 }
 0x647   :  { %2670 = vperm.xlu2 %2938, %v2665_v20   ;;  %2663 = vperm.xlu1 %2937, %v2640_v31  }
 0x648   :  { %2676 = vperm.xlu0 %2939, %v2665_v20  }
 0x64f   :  { %2941 = vset.pattern.permute.xlu2 %v2661_v54  ;;  %2940 = vset.pattern.permute.xlu1 %v3549_v4 }
 0x650   :  { %2943 = vset.pattern.permute.xlu0 %v3020_v19 }
 0x657   :  { %2688 = vperm.xlu2 %2941, %v2665_v20   ;;  %2682 = vperm.xlu1 %2940, %v2665_v20  }
 0x65f   :  { %2944 = vset.pattern.permute.xlu1 %v3020_v19  ;;  %2942 = vset.pattern.permute.xlu2 %v3020_v19 }
 0x691   :  { %v2658_v57 = vpop.permute.xlu2 %2657 }
 0x692   :  { %v3896_v29 = vadd.f32 %v2658_v57, %v3876_v34 }
 0x694   :  { %2702 = vadd.xlane.f32.xlu0 %v3896_v29 }
 0x6a1   :  { %v2671_v44 = vpop.permute.xlu2 %2670 }
 0x6a2   :  { %v3907_v19 = vadd.f32 %v2671_v44, %v2430_v6 }
 0x6a4   :  { %v2722_v24 = vmul.f32 %v3907_v19, %v3907_v19 }
 0x6a9   :  { %v2652_v30 = vpop.permute.xlu1 %2651 }
 0x6aa   :  { %v3900_v63 = vadd.f32 %v2652_v30, %v3874_v40  ;;  %v2646_v50 = vpop.permute.xlu0 %2645 }
 0x6ab   :  { %v3903_v4 = vadd.f32 %v2646_v50, %v3872_v35  ;;  %v2720_v35 = vmul.f32 %v3896_v29, %v3896_v29 }
 0x6ac   :  { %2700 = vadd.xlane.f32.xlu2 %v3900_v63  ;;  %v2719_v23 = vmul.f32 %v3900_v63, %v3900_v63 }
 0x6ad   :  { %2698 = vadd.xlane.f32.xlu1 %v3903_v4  ;;  %v2718_v22 = vmul.f32 %v3903_v4, %v3903_v4 }
 0x6b1   :  { %v2689_v34 = vpop.permute.xlu2 %2688 }
 0x6b2   :  { %v3910_v16 = vadd.f32 %v2689_v34, %v2442_v42 }
 0x6b4   :  { %2706 = vadd.xlane.f32.xlu2 %v3907_v19  ;;  %v2725_v49 = vmul.f32 %v3910_v16, %v3910_v16 }
 0x6b9   :  { %v2664_v5 = vpop.permute.xlu1 %2663 }
 0x6ba   :  { %v3913_v40 = vadd.f32 %v2664_v5, %v3879_v12  ;;  %v2677_v17 = vpop.permute.xlu0 %2676 }
 0x6bb   :  { %v3915_v7 = vadd.f32 %v2677_v17, %v2434_v15 }
 0x6bc   :  { %2712 = vadd.xlane.f32.xlu2 %v3910_v16  ;;  %2704 = vadd.xlane.f32.xlu1 %v3913_v40  ;;  %v2721_v55 = vmul.f32 %v3913_v40, %v3913_v40 }
 0x6bd   :  { %2708 = vadd.xlane.f32.xlu0 %v3915_v7  ;;  %v2723_v58 = vmul.f32 %v3915_v7, %v3915_v7 }
 0x6c4   :  { %2730 = vadd.xlane.f32.xlu2 %v2720_v35 }
 0x6c5   :  { %2726 = vadd.xlane.f32.xlu0 %v2718_v22 }
 0x6c9   :  { %v2683_v52 = vpop.permute.xlu1 %2682 }
 0x6ca   :  { %v3925_v12 = vadd.f32 %v2683_v52, %v3883_v37 }
 0x6cc   :  { %2710 = vadd.xlane.f32.xlu1 %v3925_v12  ;;  %2736 = vadd.xlane.f32.xlu2 %v2723_v58  ;;  %v2724_v25 = vmul.f32 %v3925_v12, %v3925_v12 }
 0x6cd   :  { %2732 = vadd.xlane.f32.xlu0 %v2721_v55 }
 0x6d4   :  { %2728 = vadd.xlane.f32.xlu1 %v2719_v23 }
 0x6d5   :  { %2738 = vadd.xlane.f32.xlu0 %v2724_v25 }
 0x6dc   :  { %2734 = vadd.xlane.f32.xlu1 %v2722_v24 }
 0x6e4   :  { %2740 = vadd.xlane.f32.xlu1 %v2725_v49 }
 0x707   :  { %v2703_v9 = vpop.xlane.xlu0 %2702 }
 0x71f   :  { %v2701_v10 = vpop.xlane.xlu2 %2700 }
 0x720   :  { %v2699_v1 = vpop.xlane.xlu1 %2698 }
 0x727   :  { %v2707_v27 = vpop.xlane.xlu2 %2706 }
 0x728   :  { %v2714_v18 = vadd.f32 %v2707_v27, %v2699_v1  ;;  %v2764_v27 = vld [vmem:[%s4015_s17 + $0x10] sm:$0xff] }
 0x72a   :  { %v3948_v47 = vmul.f32 0.00390625, %v2714_v18 }
 0x72c   :  { %v2754_v21 = vmul.f32 %v3948_v47, %v3948_v47 }
 0x72f   :  { %v2713_v13 = vpop.xlane.xlu2 %2712  ;;  %v2705_v59 = vpop.xlane.xlu1 %2704 }
 0x730   :  { %v2709_v8 = vpop.xlane.xlu0 %2708  ;;  %v2717_v61 = vadd.f32 %v2713_v13, %v2705_v59 }
 0x731   :  { %v2715_v32 = vadd.f32 %v2709_v8, %v2701_v10  ;;  %v2763_v10 = vld [vmem:[%s4015_s17 + $0x8] sm:$0xff] }
 0x732   :  { %v3952_v31 = vmul.f32 0.00390625, %v2717_v61 }
 0x733   :  { %v3940_v48 = vmul.f32 0.00390625, %v2715_v32 }
 0x734   :  { %v2757_v5 = vmul.f32 %v3952_v31, %v3952_v31 }
 0x735   :  { %v2755_v39 = vmul.f32 %v3940_v48, %v3940_v48 }
 0x737   :  { %v2731_v26 = vpop.xlane.xlu2 %2730 }
 0x738   :  { %v2727_v6 = vpop.xlane.xlu0 %2726 }
 0x73f   :  { %v2711_v33 = vpop.xlane.xlu1 %2710  ;;  %v2737_v15 = vpop.xlane.xlu2 %2736 }
 0x740   :  { %v2733_v53 = vpop.xlane.xlu0 %2732  ;;  %v2716_v28 = vadd.f32 %v2711_v33, %v2703_v9 }
 0x742   :  { %v3942_v36 = vmul.f32 0.00390625, %v2716_v28 }
 0x744   :  { %v2756_v42 = vmul.f32 %v3942_v36, %v3942_v36 }
 0x747   :  { %v2729_v38 = vpop.xlane.xlu1 %2728 }
 0x748   :  { %v2743_v56 = vadd.f32 %v2737_v15, %v2729_v38  ;;  %v2739_v11 = vpop.xlane.xlu0 %2738  ;;  %v2762_v15 = vld [vmem:[%s4015_s17] sm:$0xff] }
 0x749   :  { %v2744_v37 = vadd.f32 %v2739_v11, %v2731_v26 }
 0x74a   :  { %v2751_v41 = vmul.f32 0.00390625, %v2743_v56 }
 0x74b   :  { %v2752_v51 = vmul.f32 0.00390625, %v2744_v37 }
 0x74c   :  { %v2759_v0 = vsub.f32 %v2751_v41, %v2755_v39  ;;  %v2814_v39 = vld [vmem:[%s4016_s18] sm:$0xff] }
 0x74d   :  { %v2760_v43 = vsub.f32 %v2752_v51, %v2756_v42 }
 0x74e   :  { %v2767_v60 = vadd.f32 1e-05, %v2759_v0  ;;  %v2765_v0 = vld [vmem:[%s4015_s17 + $0x18] sm:$0xff] }
 0x74f   :  { %v2768_v62 = vadd.f32 1e-05, %v2760_v43  ;;  %v2735_v45 = vpop.xlane.xlu1 %2734 }
 0x750   :  { %2960 = vrsqrt.f32 %v2767_v60  ;;  %v2742_v46 = vadd.f32 %v2735_v45, %v2727_v6  ;;  %vm2786_vm11 = vweird.f32 %v2767_v60 }
 0x751   :  { %2962 = vrsqrt.f32 %v2768_v62  ;;  %vm2796_vm12 = vweird.f32 %v2768_v62 }
 0x752   :  { %v2750_v2 = vmul.f32 0.00390625, %v2742_v46 }
 0x754   :  { %v2758_v3 = vsub.f32 %v2750_v2, %v2754_v21 }
 0x756   :  { %v2961_v14 = vpop.eup %2960  ;;  %v2766_v54 = vadd.f32 1e-05, %v2758_v3  ;;  %v2817_v3 = vld [vmem:[%s4016_s18 + $0x18] sm:$0xff] }
 0x757   :  { %v2963_v20 = vpop.eup %2962  ;;  %v2781_v57 = vmul.f32 %v2961_v14, %v2767_v60  ;;  %v2741_v30 = vpop.xlane.xlu1 %2740  ;;  %vm2787_vm9 = vweird.f32 %v2961_v14 }
 0x758   :  { %v2791_v50 = vmul.f32 %v2963_v20, %v2768_v62  ;;  %2964 = vrsqrt.f32 %v2766_v54  ;;  %v2745_v44 = vadd.f32 %v2741_v30, %v2733_v53  ;;  %vm2797_vm10 = vweird.f32 %v2963_v20  ;;  %vm2788_vm13 = vmor %vm2786_vm11, %vm2787_vm9 }
 0x759   :  { %v2782_v34 = vmul.f32 %v2961_v14, %v2781_v57  ;;  %vm2798_vm14 = vmor %vm2796_vm12, %vm2797_vm10  ;;  %vm2776_vm0 = vweird.f32 %v2766_v54 }
 0x75a   :  { %v2792_v17 = vmul.f32 %v2963_v20, %v2791_v50  ;;  %v2753_v35 = vmul.f32 0.00390625, %v2745_v44 }
 0x75b   :  { %v2783_v22 = vmul.f32 0.5, %v2782_v34 }
 0x75c   :  { %v2793_v52 = vmul.f32 0.5, %v2792_v17  ;;  %v2761_v58 = vsub.f32 %v2753_v35, %v2757_v5 }
 0x75d   :  { %v2784_v55 = vsub.f32 1.5, %v2783_v22 }
 0x75e   :  { %v2965_v23 = vpop.eup %2964  ;;  %v2794_v25 = vsub.f32 1.5, %v2793_v52  ;;  %v2769_v24 = vadd.f32 1e-05, %v2761_v58 }
 0x75f   :  { %v2771_v49 = vmul.f32 %v2965_v23, %v2766_v54  ;;  %v2785_v9 = vmul.f32 %v2961_v14, %v2784_v55  ;;  %vm2777_vm15 = vweird.f32 %v2965_v23 }
 0x760   :  { %2966 = vrsqrt.f32 %v2769_v24  ;;  %v2795_v1 = vmul.f32 %v2963_v20, %v2794_v25  ;;  %vm2778_vm1 = vmor %vm2776_vm0, %vm2777_vm15  ;;  %vm2806_vm3 = vweird.f32 %v2769_v24 }
 0x761   :  { %v2772_v8 = vmul.f32 %v2965_v23, %v2771_v49  ;;  %v2789_v13 = vsel %vm2788_vm13, %v2961_v14, %v2785_v9 }
 0x762   :  { %v2811_v59 = vmul.f32 %v2789_v13, %v2763_v10  ;;  %v2799_v6 = vsel %vm2798_vm14, %v2963_v20, %v2795_v1 }
 0x763   :  { %v2773_v26 = vmul.f32 0.5, %v2772_v8  ;;  %v2812_v33 = vmul.f32 %v2799_v6, %v2764_v27 }
 0x764   :  { %2833 = vperm.xlu0 %2943, %v2811_v59   ;;  %v2819_v21 = vmul.f32 %v2811_v59, %v3940_v48 }
 0x765   :  { %v2774_v53 = vsub.f32 1.5, %v2773_v26  ;;  %2838 = vperm.xlu1 %2944, %v2812_v33   ;;  %v2820_v45 = vmul.f32 %v2812_v33, %v3942_v36  ;;  %v2815_v36 = vld [vmem:[%s4016_s18 + $0x8] sm:$0xff] }
 0x766   :  { %v2967_v32 = vpop.eup %2966  ;;  %v2823_v61 = vsub.f32 %v2815_v36, %v2819_v21 }
 0x767   :  { %v2801_v28 = vmul.f32 %v2967_v32, %v2769_v24  ;;  %v2775_v38 = vmul.f32 %v2965_v23, %v2774_v53  ;;  %vm2807_vm2 = vweird.f32 %v2967_v32 }
 0x768   :  { %vm2808_vm4 = vmor %vm2806_vm3, %vm2807_vm2 }
 0x769   :  { %v2802_v56 = vmul.f32 %v2967_v32, %v2801_v28  ;;  %v2779_v11 = vsel %vm2778_vm1, %v2965_v23, %v2775_v38 }
 0x76a   :  { %v2810_v37 = vmul.f32 %v2779_v11, %v2762_v15 }
 0x76b   :  { %v2803_v18 = vmul.f32 0.5, %v2802_v56 }
 0x76c   :  { %2828 = vperm.xlu2 %2942, %v2810_v37   ;;  %v2818_v41 = vmul.f32 %v2810_v37, %v3948_v47  ;;  %v2816_v47 = vld [vmem:[%s4016_s18 + $0x10] sm:$0xff]  ;;  %s3022_s18 = smov [#allocation2]  }
 0x76d   :  { %v2804_v42 = vsub.f32 1.5, %v2803_v18  ;;  %v2824_v46 = vsub.f32 %v2816_v47, %v2820_v45  ;;  %s2896_s23 = sshll.u32 %s3022_s18, 4  ;;  %s2897_s23 = int_to_ptr.vmem [resolvable:$true] %s2896_s23 }
 0x76e   :  { %v2822_v51 = vsub.f32 %v2814_v39, %v2818_v41 }
 0x76f   :  { %v2805_v43 = vmul.f32 %v2967_v32, %v2804_v42 }
 0x770   :  { %2856 = vperm.xlu1 %2944, %v2822_v51  }
 0x771   :  { %v2809_v60 = vsel %vm2808_vm4, %v2967_v32, %v2805_v43 }
 0x772   :  { %v2813_v62 = vmul.f32 %v2809_v60, %v2765_v0 }
 0x774   :  { %2843 = vperm.xlu2 %2942, %v2813_v62   ;;  %v2821_v2 = vmul.f32 %v2813_v62, %v3952_v31 }
 0x776   :  { %v2825_v14 = vsub.f32 %v2817_v3, %v2821_v2 }
 0x778   :  { %2866 = vperm.xlu1 %2944, %v2824_v46  }
 0x77c   :  { %2861 = vperm.xlu2 %2942, %v2823_v61  }
 0x784   :  { %2871 = vperm.xlu2 %2942, %v2825_v14  }
 0x7c6   :  { %v2829_v54 = vpop.permute.xlu2 %2828 }
 0x7c7   :  { %v2846_v58 = vmul.f32 %v2829_v54, %v3903_v4  ;;  %v2850_v55 = vmul.f32 %v2829_v54, %v3907_v19 }
 0x7ce   :  { %v2844_v20 = vpop.permute.xlu2 %2843 }
 0x7cf   :  { %v2849_v31 = vmul.f32 %v2844_v20, %v3913_v40  ;;  %v2853_v17 = vmul.f32 %v2844_v20, %v3910_v16 }
 0x7d6   :  { %v2862_v57 = vpop.permute.xlu2 %2861  ;;  %v2834_v30 = vpop.permute.xlu0 %2833 }
 0x7d7   :  { %v2847_v48 = vmul.f32 %v2834_v30, %v3900_v63  ;;  %v2851_v50 = vmul.f32 %v2834_v30, %v3915_v7  ;;  %v2839_v5 = vpop.permute.xlu1 %2838 }
 0x7d8   :  { %v2848_v16 = vmul.f32 %v2839_v5, %v3896_v29  ;;  %v2852_v40 = vmul.f32 %v2839_v5, %v3925_v12 }
 0x7d9   :  { %v2875_v44 = vadd.f32 %v2862_v57, %v2847_v48  ;;  %v2879_v34 = vadd.f32 %v2862_v57, %v2851_v50 }
 0x7db   :  { %2883 = vst [vmem:[#allocation2 + $0x8] sm:$0xff] %v2875_v44 }
 0x7dc   :  { %2887 = vst [vmem:[#allocation2 + $0x28] sm:$0xff] %v2879_v34 }
 0x7de   :  { %v2872_v35 = vpop.permute.xlu2 %2871 }
 0x7df   :  { %v2877_v22 = vadd.f32 %v2872_v35, %v2849_v31  ;;  %v2881_v52 = vadd.f32 %v2872_v35, %v2853_v17 }
 0x7e1   :  { %2885 = vst [vmem:[#allocation2 + $0x18] sm:$0xff] %v2877_v22 }
 0x7e2   :  { %2889 = vst [vmem:[#allocation2 + $0x38] sm:$0xff] %v2881_v52  ;;  %v2857_v63 = vpop.permute.xlu1 %2856 }
 0x7e3   :  { %v2874_v7 = vadd.f32 %v2857_v63, %v2846_v58  ;;  %v2878_v23 = vadd.f32 %v2857_v63, %v2850_v55 }
 0x7e5   :  { %2882 = vst [vmem:[#allocation2] sm:$0xff] %v2874_v7 }
 0x7e6   :  { %2886 = vst [vmem:[#allocation2 + $0x20] sm:$0xff] %v2878_v23 }
 0x7ea   :  { %v2867_v4 = vpop.permute.xlu1 %2866 }
 0x7eb   :  { %v2876_v25 = vadd.f32 %v2867_v4, %v2848_v16  ;;  %v2880_v19 = vadd.f32 %v2867_v4, %v2852_v40 }
 0x7ed   :  { %2884 = vst [vmem:[#allocation2 + $0x10] sm:$0xff] %v2876_v25 }
 0x7ee   :  { %2888 = vst [vmem:[#allocation2 + $0x30] sm:$0xff] %v2880_v19 }
 0x7ef   :  { %2904 = dma.vmem_to_hbm [thread:$0]  %s2897_s23, 1024, %s2899_s25, [#allocation3], %s3023_s15, %s3023_s15, %s3024_s3  }
 0x7f0   :  { %3016 = dma.done.wait [#allocation3], 1024  }
 0x7f1   :  { %3017 = vsyncadd [#allocation3], 4294966272 }
 0x7f2   :  { %3018 = dma.done.wait [#allocation5], 32  }
 0x7f3   :  { %3019 = vsyncadd [#allocation5], 4294967264 }
 0x7f4   :  { %2924 = vsyncpa [#allocation3], 1 }
 0x7f5   :  { %2925 = vsyncpa [#allocation5], 1 }

</bundles_post_ra>
